<compile_context>
chip_gen: v5e
topology: v5e:2x2
jax: 0.10.0
libtpu: 0.0.40
codegen_flags: <defaults>
</compile_context>

<pallas_src>
import jax
import jax.numpy as jnp
from jax.experimental import pallas as pl
from jax.experimental.pallas import tpu as pltpu

BN_EPS = 1e-5
L2_EPS = 1e-12   # F.normalize default eps


def _pick_tile(s):
    """Largest spatial tile (multiple of 128) that divides S, else the full extent."""
    for t in (1024, 512, 256, 128):
        if s % t == 0:
            return t
    return s


# --------------------------------------------------------------------------------------
# K1: backbone hidden layer (1x1 conv + ReLU) fused with the tail-conv1 BN statistics.
# --------------------------------------------------------------------------------------
def backbone_stats_kernel(x_ref, wb_ref, bb_ref, w1_ref, b1_ref,
                          rep_ref, sum_ref, sq_ref):
    @pl.when(pl.program_id(1) == 0)
    def _():
        sum_ref[...] = jnp.zeros_like(sum_ref)
        sq_ref[...] = jnp.zeros_like(sq_ref)

    x = x_ref[0]                                                        # (Cin, TS) bf16
    r = jnp.dot(wb_ref[...], x, preferred_element_type=jnp.float32) + bb_ref[...]
    rb = jnp.maximum(r, 0.0).astype(jnp.bfloat16)                       # hooked representation
    rep_ref[0] = rb                                                     # (Crep, TS) bf16

    # Tail conv1 output of this tile -> accumulate per-channel sum / sum-of-squares.
    h = jnp.dot(w1_ref[...], rb, preferred_element_type=jnp.float32) + b1_ref[...]
    sum_ref[...] += jnp.sum(h, axis=-1, keepdims=True)[None]            # (1, hidden, 1)
    sq_ref[...] += jnp.sum(h * h, axis=-1, keepdims=True)[None]


def backbone_and_stats(x, backbone_params, w1, b1):
    """x: (N, Cin, S) bf16. Returns rep (N, Crep, S) bf16 and per-batch conv1 stats."""
    n, cin, s = x.shape
    wb, bb = backbone_params
    crep = wb.shape[0]
    hidden = w1.shape[0]
    ts = _pick_tile(s)
    grid = (n, s // ts)
    return pl.pallas_call(
        backbone_stats_kernel,
        out_shape=(jax.ShapeDtypeStruct((n, crep, s), jnp.bfloat16),
                   jax.ShapeDtypeStruct((n, hidden, 1), jnp.float32),
                   jax.ShapeDtypeStruct((n, hidden, 1), jnp.float32)),
        grid=grid,
        in_specs=[
            pl.BlockSpec((1, cin, ts), lambda i, j: (i, 0, j)),
            pl.BlockSpec((crep, cin), lambda i, j: (0, 0)),
            pl.BlockSpec((crep, 1), lambda i, j: (0, 0)),
            pl.BlockSpec((hidden, crep), lambda i, j: (0, 0)),
            pl.BlockSpec((hidden, 1), lambda i, j: (0, 0)),
        ],
        out_specs=(
            pl.BlockSpec((1, crep, ts), lambda i, j: (i, 0, j)),
            pl.BlockSpec((1, hidden, 1), lambda i, j: (i, 0, 0)),
            pl.BlockSpec((1, hidden, 1), lambda i, j: (i, 0, 0)),
        ),
        compiler_params=pltpu.CompilerParams(
            dimension_semantics=("parallel", "arbitrary")),
    )(x, wb.astype(jnp.bfloat16), bb, w1.astype(jnp.bfloat16), b1.reshape(hidden, 1))


# --------------------------------------------------------------------------------------
# BN fold: train-mode batch statistics (biased variance) folded into conv1 weight/bias.
# --------------------------------------------------------------------------------------
def fold_bn_into_conv(sums, sqs, count, w1, b1, gamma, beta):
    mean = jnp.sum(sums[:, :, 0], axis=0) / count                       # (hidden,)
    ex2 = jnp.sum(sqs[:, :, 0], axis=0) / count
    var = jnp.maximum(ex2 - mean * mean, 0.0)
    scale = gamma * jax.lax.rsqrt(var + BN_EPS)
    shift = beta - mean * scale
    w_eff = (w1 * scale[:, None]).astype(jnp.bfloat16)                  # (hidden, Cin) bf16
    b_eff = (b1 * scale + shift).reshape(-1, 1).astype(jnp.float32)     # (hidden, 1) f32
    return w_eff, b_eff


# --------------------------------------------------------------------------------------
# K2: encoder tail apply (conv1 with folded BN -> ReLU -> conv2), fused with the
#     predictor-conv1 BN statistics over the resulting projection.
# --------------------------------------------------------------------------------------
def tail_apply_pred_stats_kernel(rep_ref, w1_ref, b1_ref, w2_ref, b2_ref,
                                 pw1_ref, pb1_ref,
                                 proj_ref, psum_ref, psq_ref):
    @pl.when(pl.program_id(1) == 0)
    def _():
        psum_ref[...] = jnp.zeros_like(psum_ref)
        psq_ref[...] = jnp.zeros_like(psq_ref)

    x = rep_ref[0]                                                      # (Crep, TS) bf16
    h = jnp.dot(w1_ref[...], x, preferred_element_type=jnp.float32) + b1_ref[...]
    h = jnp.maximum(h, 0.0)
    o = jnp.dot(w2_ref[...], h.astype(jnp.bfloat16),
                preferred_element_type=jnp.float32) + b2_ref[...]
    proj_ref[0] = o                                                     # (proj, TS) f32

    # Predictor conv1 applied to the projection while it is still in VMEM -> BN stats.
    ph = jnp.dot(pw1_ref[...], o.astype(jnp.bfloat16),
                 preferred_element_type=jnp.float32) + pb1_ref[...]
    psum_ref[...] += jnp.sum(ph, axis=-1, keepdims=True)[None]
    psq_ref[...] += jnp.sum(ph * ph, axis=-1, keepdims=True)[None]


# --------------------------------------------------------------------------------------
# K3: predictor tail (BN folded) on the online projection + target tail (BN folded) on the
#     hooked target representation + per-pixel structural loss, all in one pass.
# --------------------------------------------------------------------------------------
def target_pred_loss_kernel(proj_ref, rep_t_ref,
                            tw1_ref, tb1_ref, tw2_ref, tb2_ref,
                            pw1_ref, pb1_ref, pw2_ref, pb2_ref,
                            loss_ref):
    # online predictor(online projection)
    p = proj_ref[0].astype(jnp.bfloat16)                                # (proj, TS)
    ph = jnp.maximum(
        jnp.dot(pw1_ref[...], p, preferred_element_type=jnp.float32) + pb1_ref[...], 0.0)
    pred = jnp.dot(pw2_ref[...], ph.astype(jnp.bfloat16),
                   preferred_element_type=jnp.float32) + pb2_ref[...]   # (proj, TS) f32

    # target StructuralTail(target representation), BN already folded into conv1
    xt = rep_t_ref[0]                                                   # (Crep, TS) bf16
    th = jnp.maximum(
        jnp.dot(tw1_ref[...], xt, preferred_element_type=jnp.float32) + tb1_ref[...], 0.0)
    tgt = jnp.dot(tw2_ref[...], th.astype(jnp.bfloat16),
                  preferred_element_type=jnp.float32) + tb2_ref[...]    # (proj, TS) f32

    # structural_loss_fn: 2 - 2 * <l2norm(pred), l2norm(tgt)> per spatial position
    xn = jnp.maximum(jnp.sqrt(jnp.sum(pred * pred, axis=0, keepdims=True)), L2_EPS)
    yn = jnp.maximum(jnp.sqrt(jnp.sum(tgt * tgt, axis=0, keepdims=True)), L2_EPS)
    dot = jnp.sum(pred * tgt, axis=0, keepdims=True)                    # (1, TS)
    loss_ref[0] = 2.0 - 2.0 * dot / (xn * yn)


def predict_and_loss(online_proj, rep_target, pred_folded, target_folded):
    """Per-pixel structural loss of predictor(online_proj) vs target_tail(rep_target)."""
    n, proj_c, s = online_proj.shape
    crep = rep_target.shape[1]
    pw1_eff, pb1_eff, pw2_b, pb2_col = pred_folded
    tw1_eff, tb1_eff, tw2_b, tb2_col = target_folded
    phid, thid = pw1_eff.shape[0], tw1_eff.shape[0]
    out_c, tout_c = pw2_b.shape[0], tw2_b.shape[0]
    ts = _pick_tile(s)
    grid = (n, s // ts)
    return pl.pallas_call(
        target_pred_loss_kernel,
        out_shape=jax.ShapeDtypeStruct((n, 1, s), jnp.float32),
        grid=grid,
        in_specs=[
            pl.BlockSpec((1, proj_c, ts), lambda i, j: (i, 0, j)),
            pl.BlockSpec((1, crep, ts), lambda i, j: (i, 0, j)),
            pl.BlockSpec((thid, crep), lambda i, j: (0, 0)),
            pl.BlockSpec((thid, 1), lambda i, j: (0, 0)),
            pl.BlockSpec((tout_c, thid), lambda i, j: (0, 0)),
            pl.BlockSpec((tout_c, 1), lambda i, j: (0, 0)),
            pl.BlockSpec((phid, proj_c), lambda i, j: (0, 0)),
            pl.BlockSpec((phid, 1), lambda i, j: (0, 0)),
            pl.BlockSpec((out_c, phid), lambda i, j: (0, 0)),
            pl.BlockSpec((out_c, 1), lambda i, j: (0, 0)),
        ],
        out_specs=pl.BlockSpec((1, 1, ts), lambda i, j: (i, 0, j)),
        compiler_params=pltpu.CompilerParams(
            dimension_semantics=("parallel", "parallel")),
    )(online_proj, rep_target,
      tw1_eff, tb1_eff, tw2_b, tb2_col,
      pw1_eff, pb1_eff, pw2_b, pb2_col)


# --------------------------------------------------------------------------------------
# Encoder compositions (NetWrapper equivalents).
# --------------------------------------------------------------------------------------
def online_encode(image, backbone_params, tail_params, pred_params):
    """Online encoder projection (N, proj, S) f32 plus BN-folded predictor params."""
    n, c, h, w = image.shape
    s = h * w
    x = image.reshape(n, c, s).astype(jnp.bfloat16)                     # free reshape, no transpose
    w1, b1, gamma, beta, w2, b2 = tail_params
    pw1, pb1, pgamma, pbeta, pw2, pb2 = pred_params
    hidden, proj_c = w1.shape[0], w2.shape[0]
    phid, pout = pw1.shape[0], pw2.shape[0]
    crep = backbone_params[0].shape[0]
    count = float(n * s)

    # K1: backbone hidden layer + encoder-tail conv1 BN stats.
    rep, sums, sqs = backbone_and_stats(x, backbone_params, w1, b1)
    w1_eff, b1_eff = fold_bn_into_conv(sums, sqs, count, w1, b1, gamma, beta)

    # K2: encoder tail apply + predictor conv1 BN stats over the projection.
    ts = _pick_tile(s)
    grid = (n, s // ts)
    proj, psums, psqs = pl.pallas_call(
        tail_apply_pred_stats_kernel,
        out_shape=(jax.ShapeDtypeStruct((n, proj_c, s), jnp.float32),
                   jax.ShapeDtypeStruct((n, phid, 1), jnp.float32),
                   jax.ShapeDtypeStruct((n, phid, 1), jnp.float32)),
        grid=grid,
        in_specs=[
            pl.BlockSpec((1, crep, ts), lambda i, j: (i, 0, j)),
            pl.BlockSpec((hidden, crep), lambda i, j: (0, 0)),
            pl.BlockSpec((hidden, 1), lambda i, j: (0, 0)),
            pl.BlockSpec((proj_c, hidden), lambda i, j: (0, 0)),
            pl.BlockSpec((proj_c, 1), lambda i, j: (0, 0)),
            pl.BlockSpec((phid, proj_c), lambda i, j: (0, 0)),
            pl.BlockSpec((phid, 1), lambda i, j: (0, 0)),
        ],
        out_specs=(
            pl.BlockSpec((1, proj_c, ts), lambda i, j: (i, 0, j)),
            pl.BlockSpec((1, phid, 1), lambda i, j: (i, 0, 0)),
            pl.BlockSpec((1, phid, 1), lambda i, j: (i, 0, 0)),
        ),
        compiler_params=pltpu.CompilerParams(
            dimension_semantics=("parallel", "arbitrary")),
    )(rep, w1_eff, b1_eff, w2.astype(jnp.bfloat16), b2.reshape(proj_c, 1),
      pw1.astype(jnp.bfloat16), pb1.reshape(phid, 1))

    pw1_eff, pb1_eff = fold_bn_into_conv(psums, psqs, count, pw1, pb1, pgamma, pbeta)
    pred_folded = (pw1_eff, pb1_eff, pw2.astype(jnp.bfloat16), pb2.reshape(pout, 1))
    return proj, pred_folded


def target_encode_folded(image, backbone_params, tail_params):
    """Target encoder: hooked representation + BN-folded tail params (tail applied in K3)."""
    n, c, h, w = image.shape
    s = h * w
    x = image.reshape(n, c, s).astype(jnp.bfloat16)
    w1, b1, gamma, beta, w2, b2 = tail_params
    count = float(n * s)
    rep, sums, sqs = backbone_and_stats(x, backbone_params, w1, b1)
    w1_eff, b1_eff = fold_bn_into_conv(sums, sqs, count, w1, b1, gamma, beta)
    folded = (w1_eff, b1_eff, w2.astype(jnp.bfloat16), b2.reshape(w2.shape[0], 1))
    return rep, folded


# --------------------------------------------------------------------------------------
# StructuralBYOL forward.
# --------------------------------------------------------------------------------------
def structural_byol_forward(image_one, image_two, online_params, predictor_tail, target_params):
    online_backbone, online_tail = online_params
    target_backbone, target_tail = target_params

    # Online encoder (+ predictor BN stats, computed per projection exactly as PyTorch does).
    proj_one, pred_folded_one = online_encode(image_one, online_backbone, online_tail, predictor_tail)
    proj_two, pred_folded_two = online_encode(image_two, online_backbone, online_tail, predictor_tail)

    # Target encoder: parameter copy of the online encoder (no grad; forward only).
    rep_t_one, tgt_folded_one = target_encode_folded(image_one, target_backbone, target_tail)
    rep_t_two, tgt_folded_two = target_encode_folded(image_two, target_backbone, target_tail)

    # Fused predictor-apply + target-tail-apply + structural loss per view pairing.
    loss_one = predict_and_loss(proj_one, rep_t_two, pred_folded_one, tgt_folded_two)   # (N,1,S)
    loss_two = predict_and_loss(proj_two, rep_t_one, pred_folded_two, tgt_folded_one)   # (N,1,S)
    return jnp.mean(loss_one + loss_two)


# --------------------------------------------------------------------------------------
# Parameter construction (PyTorch-like init shapes; 1x1 conv weights stored as (out, in)).
# --------------------------------------------------------------------------------------
def make_tail_params(key, c_in, hidden, proj, scale=0.1):
    k1, k2, k3, k4 = jax.random.split(key, 4)
    w1 = scale * jax.random.normal(k1, (hidden, c_in), jnp.float32)
    b1 = scale * jax.random.normal(k2, (hidden,), jnp.float32)
    gamma = jnp.ones((hidden,), jnp.float32)       # BatchNorm2d weight init
    beta = jnp.zeros((hidden,), jnp.float32)       # BatchNorm2d bias init
    w2 = scale * jax.random.normal(k3, (proj, hidden), jnp.float32)
    b2 = scale * jax.random.normal(k4, (proj,), jnp.float32)
    return (w1, b1, gamma, beta, w2, b2)


def make_encoder_params(key, c_in, c_rep, hidden, proj, scale=0.1):
    kb, kt = jax.random.split(key)
    kbw, kbb = jax.random.split(kb)
    wb = scale * jax.random.normal(kbw, (c_rep, c_in), jnp.float32)
    bb = scale * jax.random.normal(kbb, (c_rep, 1), jnp.float32)
    return (wb, bb), make_tail_params(kt, c_rep, hidden, proj, scale)


if __name__ == "__main__":
    key = jax.random.PRNGKey(0)
    k_img1, k_img2, k_online, k_pred = jax.random.split(key, 4)

    # Small shapes implied by StructuralBYOL.__init__ self-test: 3-channel square images.
    N, C, H, W = 2, 3, 16, 16
    C_REP = 16      # channels of the hooked hidden representation
    HIDDEN = 32     # projection_hidden_size
    PROJ = 8        # projection_size

    image_one = jax.random.normal(k_img1, (N, C, H, W), jnp.float32)
    image_two = jax.random.normal(k_img2, (N, C, H, W), jnp.float32)

    online_params = make_encoder_params(k_online, C, C_REP, HIDDEN, PROJ)
    predictor_tail = make_tail_params(k_pred, PROJ, HIDDEN, PROJ)
    target_params = online_params   # deepcopy of online encoder at creation (pre-EMA)

    loss_fn = jax.jit(structural_byol_forward)
    loss = loss_fn(image_one, image_two, online_params, predictor_tail, target_params)
    loss = jax.block_until_ready(loss)

    assert loss.shape == (), loss.shape
    assert bool(jnp.isfinite(loss))
    print("KERNEL_OK")
</pallas_src>

<mosaic_0001>
module attributes {stable_mosaic.version = 11 : i64} {
  func.func @backbone_stats_kernel(%arg0: i32, %arg1: i32, %arg2: memref<1x3x256xbf16, #tpu.memory_space<vmem>>, %arg3: memref<16x3xbf16, #tpu.memory_space<vmem>>, %arg4: memref<16x1xf32, #tpu.memory_space<vmem>>, %arg5: memref<32x16xbf16, #tpu.memory_space<vmem>>, %arg6: memref<32x1xf32, #tpu.memory_space<vmem>>, %arg7: memref<1x16x256xbf16, #tpu.memory_space<vmem>>, %arg8: memref<1x32x1xf32, #tpu.memory_space<vmem>>, %arg9: memref<1x32x1xf32, #tpu.memory_space<vmem>>) attributes {dimension_semantics = [#tpu.dimension_semantics<parallel>, #tpu.dimension_semantics<arbitrary>], iteration_bounds = array<i64: 2, 1>, scalar_prefetch = 0 : i64, scratch_operands = 0 : i64, tpu.core_type = #tpu.core_type<tc>, window_params = [{transform_indices = @transform_0, window_bounds = array<i64: 1, 3, 256>}, {pipeline_mode = #tpu.pipeline_mode<synchronous>, transform_indices = @transform_1, window_bounds = array<i64: 16, 3>}, {pipeline_mode = #tpu.pipeline_mode<synchronous>, transform_indices = @transform_2, window_bounds = array<i64: 16, 1>}, {pipeline_mode = #tpu.pipeline_mode<synchronous>, transform_indices = @transform_3, window_bounds = array<i64: 32, 16>}, {pipeline_mode = #tpu.pipeline_mode<synchronous>, transform_indices = @transform_4, window_bounds = array<i64: 32, 1>}, {transform_indices = @transform_5, window_bounds = array<i64: 1, 16, 256>}, {transform_indices = @transform_6, window_bounds = array<i64: 1, 32, 1>}, {transform_indices = @transform_7, window_bounds = array<i64: 1, 32, 1>}]} {
    %c0_i32 = arith.constant 0 : i32
    %0 = arith.cmpi eq, %arg1, %c0_i32 : i32
    %1 = arith.extui %0 : i1 to i32
    %c0_i32_0 = arith.constant 0 : i32
    %2 = arith.cmpi ne, %1, %c0_i32_0 : i32
    scf.if %2 {
      %cst_30 = arith.constant 0.000000e+00 : f32
      %34 = vector.broadcast %cst_30 : f32 to vector<1x32x1xf32>
      %c0_31 = arith.constant 0 : index
      %c0_32 = arith.constant 0 : index
      %c0_33 = arith.constant 0 : index
      %35 = vector.load %arg8[%c0_31, %c0_32, %c0_33] : memref<1x32x1xf32, #tpu.memory_space<vmem>>, vector<1x32x1xf32>
      tpu.vector_store %arg8[%c0_31, %c0_32, %c0_33], %34 {strides = array<i32>} : memref<1x32x1xf32, #tpu.memory_space<vmem>>, vector<1x32x1xf32>,
      %cst_34 = arith.constant 0.000000e+00 : f32
      %36 = vector.broadcast %cst_34 : f32 to vector<1x32x1xf32>
      %c0_35 = arith.constant 0 : index
      %c0_36 = arith.constant 0 : index
      %c0_37 = arith.constant 0 : index
      %37 = vector.load %arg9[%c0_35, %c0_36, %c0_37] : memref<1x32x1xf32, #tpu.memory_space<vmem>>, vector<1x32x1xf32>
      tpu.vector_store %arg9[%c0_35, %c0_36, %c0_37], %36 {strides = array<i32>} : memref<1x32x1xf32, #tpu.memory_space<vmem>>, vector<1x32x1xf32>,
    } else {
    }
    %c0 = arith.constant 0 : index
    %c0_1 = arith.constant 0 : index
    %c0_2 = arith.constant 0 : index
    %3 = vector.load %arg2[%c0, %c0_1, %c0_2] : memref<1x3x256xbf16, #tpu.memory_space<vmem>>, vector<1x3x256xbf16>
    %4 = vector.shape_cast %3 : vector<1x3x256xbf16> to vector<3x256xbf16>
    %c0_3 = arith.constant 0 : index
    %c0_4 = arith.constant 0 : index
    %5 = vector.load %arg3[%c0_3, %c0_4] : memref<16x3xbf16, #tpu.memory_space<vmem>>, vector<16x3xbf16>
    %cst = arith.constant dense<0.000000e+00> : vector<16x256xf32>
    %6 = tpu.matmul %5, %4, %cst {dimension_numbers = #tpu.dot_dimension_numbers<[1], [0], [0], [1], [0, 0, 1, 1], [], []>} : vector<16x3xbf16>, vector<3x256xbf16>, vector<16x256xf32> -> vector<16x256xf32>
    %c0_5 = arith.constant 0 : index
    %c0_6 = arith.constant 0 : index
    %7 = vector.load %arg4[%c0_5, %c0_6] : memref<16x1xf32, #tpu.memory_space<vmem>>, vector<16x1xf32>
    %8 = vector.broadcast %7 : vector<16x1xf32> to vector<16x256xf32>
    %9 = arith.addf %6, %8 : vector<16x256xf32>
    %cst_7 = arith.constant 0.000000e+00 : f32
    %10 = vector.broadcast %cst_7 : f32 to vector<16x256xf32>
    %11 = arith.maximumf %9, %10 : vector<16x256xf32>
    %12 = arith.truncf %11 : vector<16x256xf32> to vector<16x256xbf16>
    %c0_8 = arith.constant 0 : index
    %c0_9 = arith.constant 0 : index
    %c0_10 = arith.constant 0 : index
    %13 = vector.load %arg7[%c0_8, %c0_9, %c0_10] : memref<1x16x256xbf16, #tpu.memory_space<vmem>>, vector<1x16x256xbf16>
    %14 = vector.shape_cast %13 : vector<1x16x256xbf16> to vector<16x256xbf16>
    %15 = vector.shape_cast %12 : vector<16x256xbf16> to vector<1x16x256xbf16>
    tpu.vector_store %arg7[%c0_8, %c0_9, %c0_10], %15 {strides = array<i32>} : memref<1x16x256xbf16, #tpu.memory_space<vmem>>, vector<1x16x256xbf16>,
    %c0_11 = arith.constant 0 : index
    %c0_12 = arith.constant 0 : index
    %16 = vector.load %arg5[%c0_11, %c0_12] : memref<32x16xbf16, #tpu.memory_space<vmem>>, vector<32x16xbf16>
    %cst_13 = arith.constant dense<0.000000e+00> : vector<32x256xf32>
    %17 = tpu.matmul %16, %12, %cst_13 {dimension_numbers = #tpu.dot_dimension_numbers<[1], [0], [0], [1], [0, 0, 1, 1], [], []>} : vector<32x16xbf16>, vector<16x256xbf16>, vector<32x256xf32> -> vector<32x256xf32>
    %c0_14 = arith.constant 0 : index
    %c0_15 = arith.constant 0 : index
    %18 = vector.load %arg6[%c0_14, %c0_15] : memref<32x1xf32, #tpu.memory_space<vmem>>, vector<32x1xf32>
    %19 = vector.broadcast %18 : vector<32x1xf32> to vector<32x256xf32>
    %20 = arith.addf %17, %19 : vector<32x256xf32>
    %c0_16 = arith.constant 0 : index
    %c0_17 = arith.constant 0 : index
    %c0_18 = arith.constant 0 : index
    %21 = vector.load %arg8[%c0_16, %c0_17, %c0_18] : memref<1x32x1xf32, #tpu.memory_space<vmem>>, vector<1x32x1xf32>
    %cst_19 = arith.constant dense<0.000000e+00> : vector<32xf32>
    %22 = vector.multi_reduction <add>, %20, %cst_19 [1] : vector<32x256xf32> to vector<32xf32>
    %23 = vector.shape_cast %22 : vector<32xf32> to vector<32x1xf32>
    %24 = vector.shape_cast %23 : vector<32x1xf32> to vector<1x32x1xf32>
    %25 = arith.addf %21, %24 : vector<1x32x1xf32>
    %c0_20 = arith.constant 0 : index
    %c0_21 = arith.constant 0 : index
    %c0_22 = arith.constant 0 : index
    %26 = vector.load %arg8[%c0_20, %c0_21, %c0_22] : memref<1x32x1xf32, #tpu.memory_space<vmem>>, vector<1x32x1xf32>
    tpu.vector_store %arg8[%c0_20, %c0_21, %c0_22], %25 {strides = array<i32>} : memref<1x32x1xf32, #tpu.memory_space<vmem>>, vector<1x32x1xf32>,
    %c0_23 = arith.constant 0 : index
    %c0_24 = arith.constant 0 : index
    %c0_25 = arith.constant 0 : index
    %27 = vector.load %arg9[%c0_23, %c0_24, %c0_25] : memref<1x32x1xf32, #tpu.memory_space<vmem>>, vector<1x32x1xf32>
    %28 = arith.mulf %20, %20 : vector<32x256xf32>
    %cst_26 = arith.constant dense<0.000000e+00> : vector<32xf32>
    %29 = vector.multi_reduction <add>, %28, %cst_26 [1] : vector<32x256xf32> to vector<32xf32>
    %30 = vector.shape_cast %29 : vector<32xf32> to vector<32x1xf32>
    %31 = vector.shape_cast %30 : vector<32x1xf32> to vector<1x32x1xf32>
    %32 = arith.addf %27, %31 : vector<1x32x1xf32>
    %c0_27 = arith.constant 0 : index
    %c0_28 = arith.constant 0 : index
    %c0_29 = arith.constant 0 : index
    %33 = vector.load %arg9[%c0_27, %c0_28, %c0_29] : memref<1x32x1xf32, #tpu.memory_space<vmem>>, vector<1x32x1xf32>
    tpu.vector_store %arg9[%c0_27, %c0_28, %c0_29], %32 {strides = array<i32>} : memref<1x32x1xf32, #tpu.memory_space<vmem>>, vector<1x32x1xf32>,
    return
  }
  func.func @transform_0(%arg0: i32, %arg1: i32) -> (i32, i32, i32) {
    %c0_i32 = arith.constant 0 : i32
    %c0_i32_0 = arith.constant 0 : i32
    return %arg0, %c0_i32, %arg1 : i32, i32, i32
  }
  func.func @transform_1(%arg0: i32, %arg1: i32) -> (i32, i32) {
    %c0_i32 = arith.constant 0 : i32
    %c0_i32_0 = arith.constant 0 : i32
    %c0_i32_1 = arith.constant 0 : i32
    return %c0_i32, %c0_i32_0 : i32, i32
  }
  func.func @transform_2(%arg0: i32, %arg1: i32) -> (i32, i32) {
    %c0_i32 = arith.constant 0 : i32
    %c0_i32_0 = arith.constant 0 : i32
    %c0_i32_1 = arith.constant 0 : i32
    return %c0_i32, %c0_i32_0 : i32, i32
  }
  func.func @transform_3(%arg0: i32, %arg1: i32) -> (i32, i32) {
    %c0_i32 = arith.constant 0 : i32
    %c0_i32_0 = arith.constant 0 : i32
    %c0_i32_1 = arith.constant 0 : i32
    return %c0_i32, %c0_i32_0 : i32, i32
  }
  func.func @transform_4(%arg0: i32, %arg1: i32) -> (i32, i32) {
    %c0_i32 = arith.constant 0 : i32
    %c0_i32_0 = arith.constant 0 : i32
    %c0_i32_1 = arith.constant 0 : i32
    return %c0_i32, %c0_i32_0 : i32, i32
  }
  func.func @transform_5(%arg0: i32, %arg1: i32) -> (i32, i32, i32) {
    %c0_i32 = arith.constant 0 : i32
    %c0_i32_0 = arith.constant 0 : i32
    return %arg0, %c0_i32, %arg1 : i32, i32, i32
  }
  func.func @transform_6(%arg0: i32, %arg1: i32) -> (i32, i32, i32) {
    %c0_i32 = arith.constant 0 : i32
    %c0_i32_0 = arith.constant 0 : i32
    %c0_i32_1 = arith.constant 0 : i32
    return %arg0, %c0_i32, %c0_i32_0 : i32, i32, i32
  }
  func.func @transform_7(%arg0: i32, %arg1: i32) -> (i32, i32, i32) {
    %c0_i32 = arith.constant 0 : i32
    %c0_i32_0 = arith.constant 0 : i32
    %c0_i32_1 = arith.constant 0 : i32
    return %arg0, %c0_i32, %c0_i32_0 : i32, i32, i32
  }
}

module attributes {stable_mosaic.version = 11 : i64} {
  func.func @target_pred_loss_kernel(%arg0: i32, %arg1: i32, %arg2: memref<1x8x256xf32, #tpu.memory_space<vmem>>, %arg3: memref<1x16x256xbf16, #tpu.memory_space<vmem>>, %arg4: memref<32x16xbf16, #tpu.memory_space<vmem>>, %arg5: memref<32x1xf32, #tpu.memory_space<vmem>>, %arg6: memref<8x32xbf16, #tpu.memory_space<vmem>>, %arg7: memref<8x1xf32, #tpu.memory_space<vmem>>, %arg8: memref<32x8xbf16, #tpu.memory_space<vmem>>, %arg9: memref<32x1xf32, #tpu.memory_space<vmem>>, %arg10: memref<8x32xbf16, #tpu.memory_space<vmem>>, %arg11: memref<8x1xf32, #tpu.memory_space<vmem>>, %arg12: memref<1x1x256xf32, #tpu.memory_space<vmem>>) attributes {dimension_semantics = [#tpu.dimension_semantics<parallel>, #tpu.dimension_semantics<parallel>], iteration_bounds = array<i64: 2, 1>, scalar_prefetch = 0 : i64, scratch_operands = 0 : i64, tpu.core_type = #tpu.core_type<tc>, window_params = [{transform_indices = @transform_0, window_bounds = array<i64: 1, 8, 256>}, {transform_indices = @transform_1, window_bounds = array<i64: 1, 16, 256>}, {pipeline_mode = #tpu.pipeline_mode<synchronous>, transform_indices = @transform_2, window_bounds = array<i64: 32, 16>}, {pipeline_mode = #tpu.pipeline_mode<synchronous>, transform_indices = @transform_3, window_bounds = array<i64: 32, 1>}, {pipeline_mode = #tpu.pipeline_mode<synchronous>, transform_indices = @transform_4, window_bounds = array<i64: 8, 32>}, {pipeline_mode = #tpu.pipeline_mode<synchronous>, transform_indices = @transform_5, window_bounds = array<i64: 8, 1>}, {pipeline_mode = #tpu.pipeline_mode<synchronous>, transform_indices = @transform_6, window_bounds = array<i64: 32, 8>}, {pipeline_mode = #tpu.pipeline_mode<synchronous>, transform_indices = @transform_7, window_bounds = array<i64: 32, 1>}, {pipeline_mode = #tpu.pipeline_mode<synchronous>, transform_indices = @transform_8, window_bounds = array<i64: 8, 32>}, {pipeline_mode = #tpu.pipeline_mode<synchronous>, transform_indices = @transform_9, window_bounds = array<i64: 8, 1>}, {transform_indices = @transform_10, window_bounds = array<i64: 1, 1, 256>}]} {
    %c0 = arith.constant 0 : index
    %c0_0 = arith.constant 0 : index
    %c0_1 = arith.constant 0 : index
    %0 = vector.load %arg2[%c0, %c0_0, %c0_1] : memref<1x8x256xf32, #tpu.memory_space<vmem>>, vector<1x8x256xf32>
    %1 = vector.shape_cast %0 : vector<1x8x256xf32> to vector<8x256xf32>
    %2 = arith.truncf %1 : vector<8x256xf32> to vector<8x256xbf16>
    %c0_2 = arith.constant 0 : index
    %c0_3 = arith.constant 0 : index
    %3 = vector.load %arg8[%c0_2, %c0_3] : memref<32x8xbf16, #tpu.memory_space<vmem>>, vector<32x8xbf16>
    %cst = arith.constant dense<0.000000e+00> : vector<32x256xf32>
    %4 = tpu.matmul %3, %2, %cst {dimension_numbers = #tpu.dot_dimension_numbers<[1], [0], [0], [1], [0, 0, 1, 1], [], []>} : vector<32x8xbf16>, vector<8x256xbf16>, vector<32x256xf32> -> vector<32x256xf32>
    %c0_4 = arith.constant 0 : index
    %c0_5 = arith.constant 0 : index
    %5 = vector.load %arg9[%c0_4, %c0_5] : memref<32x1xf32, #tpu.memory_space<vmem>>, vector<32x1xf32>
    %6 = vector.broadcast %5 : vector<32x1xf32> to vector<32x256xf32>
    %7 = arith.addf %4, %6 : vector<32x256xf32>
    %cst_6 = arith.constant 0.000000e+00 : f32
    %8 = vector.broadcast %cst_6 : f32 to vector<32x256xf32>
    %9 = arith.maximumf %7, %8 : vector<32x256xf32>
    %c0_7 = arith.constant 0 : index
    %c0_8 = arith.constant 0 : index
    %10 = vector.load %arg10[%c0_7, %c0_8] : memref<8x32xbf16, #tpu.memory_space<vmem>>, vector<8x32xbf16>
    %11 = arith.truncf %9 : vector<32x256xf32> to vector<32x256xbf16>
    %cst_9 = arith.constant dense<0.000000e+00> : vector<8x256xf32>
    %12 = tpu.matmul %10, %11, %cst_9 {dimension_numbers = #tpu.dot_dimension_numbers<[1], [0], [0], [1], [0, 0, 1, 1], [], []>} : vector<8x32xbf16>, vector<32x256xbf16>, vector<8x256xf32> -> vector<8x256xf32>
    %c0_10 = arith.constant 0 : index
    %c0_11 = arith.constant 0 : index
    %13 = vector.load %arg11[%c0_10, %c0_11] : memref<8x1xf32, #tpu.memory_space<vmem>>, vector<8x1xf32>
    %14 = vector.broadcast %13 : vector<8x1xf32> to vector<8x256xf32>
    %15 = arith.addf %12, %14 : vector<8x256xf32>
    %c0_12 = arith.constant 0 : index
    %c0_13 = arith.constant 0 : index
    %c0_14 = arith.constant 0 : index
    %16 = vector.load %arg3[%c0_12, %c0_13, %c0_14] : memref<1x16x256xbf16, #tpu.memory_space<vmem>>, vector<1x16x256xbf16>
    %17 = vector.shape_cast %16 : vector<1x16x256xbf16> to vector<16x256xbf16>
    %c0_15 = arith.constant 0 : index
    %c0_16 = arith.constant 0 : index
    %18 = vector.load %arg4[%c0_15, %c0_16] : memref<32x16xbf16, #tpu.memory_space<vmem>>, vector<32x16xbf16>
    %cst_17 = arith.constant dense<0.000000e+00> : vector<32x256xf32>
    %19 = tpu.matmul %18, %17, %cst_17 {dimension_numbers = #tpu.dot_dimension_numbers<[1], [0], [0], [1], [0, 0, 1, 1], [], []>} : vector<32x16xbf16>, vector<16x256xbf16>, vector<32x256xf32> -> vector<32x256xf32>
    %c0_18 = arith.constant 0 : index
    %c0_19 = arith.constant 0 : index
    %20 = vector.load %arg5[%c0_18, %c0_19] : memref<32x1xf32, #tpu.memory_space<vmem>>, vector<32x1xf32>
    %21 = vector.broadcast %20 : vector<32x1xf32> to vector<32x256xf32>
    %22 = arith.addf %19, %21 : vector<32x256xf32>
    %cst_20 = arith.constant 0.000000e+00 : f32
    %23 = vector.broadcast %cst_20 : f32 to vector<32x256xf32>
    %24 = arith.maximumf %22, %23 : vector<32x256xf32>
    %c0_21 = arith.constant 0 : index
    %c0_22 = arith.constant 0 : index
    %25 = vector.load %arg6[%c0_21, %c0_22] : memref<8x32xbf16, #tpu.memory_space<vmem>>, vector<8x32xbf16>
    %26 = arith.truncf %24 : vector<32x256xf32> to vector<32x256xbf16>
    %cst_23 = arith.constant dense<0.000000e+00> : vector<8x256xf32>
    %27 = tpu.matmul %25, %26, %cst_23 {dimension_numbers = #tpu.dot_dimension_numbers<[1], [0], [0], [1], [0, 0, 1, 1], [], []>} : vector<8x32xbf16>, vector<32x256xbf16>, vector<8x256xf32> -> vector<8x256xf32>
    %c0_24 = arith.constant 0 : index
    %c0_25 = arith.constant 0 : index
    %28 = vector.load %arg7[%c0_24, %c0_25] : memref<8x1xf32, #tpu.memory_space<vmem>>, vector<8x1xf32>
    %29 = vector.broadcast %28 : vector<8x1xf32> to vector<8x256xf32>
    %30 = arith.addf %27, %29 : vector<8x256xf32>
    %31 = arith.mulf %15, %15 : vector<8x256xf32>
    %cst_26 = arith.constant dense<0.000000e+00> : vector<256xf32>
    %32 = vector.multi_reduction <add>, %31, %cst_26 [0] : vector<8x256xf32> to vector<256xf32>
    %33 = vector.shape_cast %32 : vector<256xf32> to vector<1x256xf32>
    %34 = math.sqrt %33 : vector<1x256xf32>
    %cst_27 = arith.constant 9.99999996E-13 : f32
    %35 = vector.broadcast %cst_27 : f32 to vector<1x256xf32>
    %36 = arith.maximumf %34, %35 : vector<1x256xf32>
    %37 = arith.mulf %30, %30 : vector<8x256xf32>
    %cst_28 = arith.constant dense<0.000000e+00> : vector<256xf32>
    %38 = vector.multi_reduction <add>, %37, %cst_28 [0] : vector<8x256xf32> to vector<256xf32>
    %39 = vector.shape_cast %38 : vector<256xf32> to vector<1x256xf32>
    %40 = math.sqrt %39 : vector<1x256xf32>
    %cst_29 = arith.constant 9.99999996E-13 : f32
    %41 = vector.broadcast %cst_29 : f32 to vector<1x256xf32>
    %42 = arith.maximumf %40, %41 : vector<1x256xf32>
    %43 = arith.mulf %15, %30 : vector<8x256xf32>
    %cst_30 = arith.constant dense<0.000000e+00> : vector<256xf32>
    %44 = vector.multi_reduction <add>, %43, %cst_30 [0] : vector<8x256xf32> to vector<256xf32>
    %45 = vector.shape_cast %44 : vector<256xf32> to vector<1x256xf32>
    %cst_31 = arith.constant 2.000000e+00 : f32
    %46 = vector.broadcast %cst_31 : f32 to vector<1x256xf32>
    %47 = arith.mulf %46, %45 : vector<1x256xf32>
    %48 = arith.mulf %36, %42 : vector<1x256xf32>
    %49 = arith.divf %47, %48 : vector<1x256xf32>
    %cst_32 = arith.constant 2.000000e+00 : f32
    %50 = vector.broadcast %cst_32 : f32 to vector<1x256xf32>
    %51 = arith.subf %50, %49 : vector<1x256xf32>
    %c0_33 = arith.constant 0 : index
    %c0_34 = arith.constant 0 : index
    %c0_35 = arith.constant 0 : index
    %52 = vector.load %arg12[%c0_33, %c0_34, %c0_35] : memref<1x1x256xf32, #tpu.memory_space<vmem>>, vector<1x1x256xf32>
    %53 = vector.shape_cast %52 : vector<1x1x256xf32> to vector<1x256xf32>
    %54 = vector.shape_cast %51 : vector<1x256xf32> to vector<1x1x256xf32>
    tpu.vector_store %arg12[%c0_33, %c0_34, %c0_35], %54 {strides = array<i32>} : memref<1x1x256xf32, #tpu.memory_space<vmem>>, vector<1x1x256xf32>,
    return
  }
  func.func @transform_0(%arg0: i32, %arg1: i32) -> (i32, i32, i32) {
    %c0_i32 = arith.constant 0 : i32
    %c0_i32_0 = arith.constant 0 : i32
    return %arg0, %c0_i32, %arg1 : i32, i32, i32
  }
  func.func @transform_1(%arg0: i32, %arg1: i32) -> (i32, i32, i32) {
    %c0_i32 = arith.constant 0 : i32
    %c0_i32_0 = arith.constant 0 : i32
    return %arg0, %c0_i32, %arg1 : i32, i32, i32
  }
  func.func @transform_2(%arg0: i32, %arg1: i32) -> (i32, i32) {
    %c0_i32 = arith.constant 0 : i32
    %c0_i32_0 = arith.constant 0 : i32
    %c0_i32_1 = arith.constant 0 : i32
    return %c0_i32, %c0_i32_0 : i32, i32
  }
  func.func @transform_3(%arg0: i32, %arg1: i32) -> (i32, i32) {
    %c0_i32 = arith.constant 0 : i32
    %c0_i32_0 = arith.constant 0 : i32
    %c0_i32_1 = arith.constant 0 : i32
    return %c0_i32, %c0_i32_0 : i32, i32
  }
  func.func @transform_4(%arg0: i32, %arg1: i32) -> (i32, i32) {
    %c0_i32 = arith.constant 0 : i32
    %c0_i32_0 = arith.constant 0 : i32
    %c0_i32_1 = arith.constant 0 : i32
    return %c0_i32, %c0_i32_0 : i32, i32
  }
  func.func @transform_5(%arg0: i32, %arg1: i32) -> (i32, i32) {
    %c0_i32 = arith.constant 0 : i32
    %c0_i32_0 = arith.constant 0 : i32
    %c0_i32_1 = arith.constant 0 : i32
    return %c0_i32, %c0_i32_0 : i32, i32
  }
  func.func @transform_6(%arg0: i32, %arg1: i32) -> (i32, i32) {
    %c0_i32 = arith.constant 0 : i32
    %c0_i32_0 = arith.constant 0 : i32
    %c0_i32_1 = arith.constant 0 : i32
    return %c0_i32, %c0_i32_0 : i32, i32
  }
  func.func @transform_7(%arg0: i32, %arg1: i32) -> (i32, i32) {
    %c0_i32 = arith.constant 0 : i32
    %c0_i32_0 = arith.constant 0 : i32
    %c0_i32_1 = arith.constant 0 : i32
    return %c0_i32, %c0_i32_0 : i32, i32
  }
  func.func @transform_8(%arg0: i32, %arg1: i32) -> (i32, i32) {
    %c0_i32 = arith.constant 0 : i32
    %c0_i32_0 = arith.constant 0 : i32
    %c0_i32_1 = arith.constant 0 : i32
    return %c0_i32, %c0_i32_0 : i32, i32
  }
  func.func @transform_9(%arg0: i32, %arg1: i32) -> (i32, i32) {
    %c0_i32 = arith.constant 0 : i32
    %c0_i32_0 = arith.constant 0 : i32
    %c0_i32_1 = arith.constant 0 : i32
    return %c0_i32, %c0_i32_0 : i32, i32
  }
  func.func @transform_10(%arg0: i32, %arg1: i32) -> (i32, i32, i32) {
    %c0_i32 = arith.constant 0 : i32
    %c0_i32_0 = arith.constant 0 : i32
    return %arg0, %c0_i32, %arg1 : i32, i32, i32
  }
}

module attributes {stable_mosaic.version = 11 : i64} {
  func.func @tail_apply_pred_stats_kernel(%arg0: i32, %arg1: i32, %arg2: memref<1x16x256xbf16, #tpu.memory_space<vmem>>, %arg3: memref<32x16xbf16, #tpu.memory_space<vmem>>, %arg4: memref<32x1xf32, #tpu.memory_space<vmem>>, %arg5: memref<8x32xbf16, #tpu.memory_space<vmem>>, %arg6: memref<8x1xf32, #tpu.memory_space<vmem>>, %arg7: memref<32x8xbf16, #tpu.memory_space<vmem>>, %arg8: memref<32x1xf32, #tpu.memory_space<vmem>>, %arg9: memref<1x8x256xf32, #tpu.memory_space<vmem>>, %arg10: memref<1x32x1xf32, #tpu.memory_space<vmem>>, %arg11: memref<1x32x1xf32, #tpu.memory_space<vmem>>) attributes {dimension_semantics = [#tpu.dimension_semantics<parallel>, #tpu.dimension_semantics<arbitrary>], iteration_bounds = array<i64: 2, 1>, scalar_prefetch = 0 : i64, scratch_operands = 0 : i64, tpu.core_type = #tpu.core_type<tc>, window_params = [{transform_indices = @transform_0, window_bounds = array<i64: 1, 16, 256>}, {pipeline_mode = #tpu.pipeline_mode<synchronous>, transform_indices = @transform_1, window_bounds = array<i64: 32, 16>}, {pipeline_mode = #tpu.pipeline_mode<synchronous>, transform_indices = @transform_2, window_bounds = array<i64: 32, 1>}, {pipeline_mode = #tpu.pipeline_mode<synchronous>, transform_indices = @transform_3, window_bounds = array<i64: 8, 32>}, {pipeline_mode = #tpu.pipeline_mode<synchronous>, transform_indices = @transform_4, window_bounds = array<i64: 8, 1>}, {pipeline_mode = #tpu.pipeline_mode<synchronous>, transform_indices = @transform_5, window_bounds = array<i64: 32, 8>}, {pipeline_mode = #tpu.pipeline_mode<synchronous>, transform_indices = @transform_6, window_bounds = array<i64: 32, 1>}, {transform_indices = @transform_7, window_bounds = array<i64: 1, 8, 256>}, {transform_indices = @transform_8, window_bounds = array<i64: 1, 32, 1>}, {transform_indices = @transform_9, window_bounds = array<i64: 1, 32, 1>}]} {
    %c0_i32 = arith.constant 0 : i32
    %0 = arith.cmpi eq, %arg1, %c0_i32 : i32
    %1 = arith.extui %0 : i1 to i32
    %c0_i32_0 = arith.constant 0 : i32
    %2 = arith.cmpi ne, %1, %c0_i32_0 : i32
    scf.if %2 {
      %cst_35 = arith.constant 0.000000e+00 : f32
      %40 = vector.broadcast %cst_35 : f32 to vector<1x32x1xf32>
      %c0_36 = arith.constant 0 : index
      %c0_37 = arith.constant 0 : index
      %c0_38 = arith.constant 0 : index
      %41 = vector.load %arg10[%c0_36, %c0_37, %c0_38] : memref<1x32x1xf32, #tpu.memory_space<vmem>>, vector<1x32x1xf32>
      tpu.vector_store %arg10[%c0_36, %c0_37, %c0_38], %40 {strides = array<i32>} : memref<1x32x1xf32, #tpu.memory_space<vmem>>, vector<1x32x1xf32>,
      %cst_39 = arith.constant 0.000000e+00 : f32
      %42 = vector.broadcast %cst_39 : f32 to vector<1x32x1xf32>
      %c0_40 = arith.constant 0 : index
      %c0_41 = arith.constant 0 : index
      %c0_42 = arith.constant 0 : index
      %43 = vector.load %arg11[%c0_40, %c0_41, %c0_42] : memref<1x32x1xf32, #tpu.memory_space<vmem>>, vector<1x32x1xf32>
      tpu.vector_store %arg11[%c0_40, %c0_41, %c0_42], %42 {strides = array<i32>} : memref<1x32x1xf32, #tpu.memory_space<vmem>>, vector<1x32x1xf32>,
    } else {
    }
    %c0 = arith.constant 0 : index
    %c0_1 = arith.constant 0 : index
    %c0_2 = arith.constant 0 : index
    %3 = vector.load %arg2[%c0, %c0_1, %c0_2] : memref<1x16x256xbf16, #tpu.memory_space<vmem>>, vector<1x16x256xbf16>
    %4 = vector.shape_cast %3 : vector<1x16x256xbf16> to vector<16x256xbf16>
    %c0_3 = arith.constant 0 : index
    %c0_4 = arith.constant 0 : index
    %5 = vector.load %arg3[%c0_3, %c0_4] : memref<32x16xbf16, #tpu.memory_space<vmem>>, vector<32x16xbf16>
    %cst = arith.constant dense<0.000000e+00> : vector<32x256xf32>
    %6 = tpu.matmul %5, %4, %cst {dimension_numbers = #tpu.dot_dimension_numbers<[1], [0], [0], [1], [0, 0, 1, 1], [], []>} : vector<32x16xbf16>, vector<16x256xbf16>, vector<32x256xf32> -> vector<32x256xf32>
    %c0_5 = arith.constant 0 : index
    %c0_6 = arith.constant 0 : index
    %7 = vector.load %arg4[%c0_5, %c0_6] : memref<32x1xf32, #tpu.memory_space<vmem>>, vector<32x1xf32>
    %8 = vector.broadcast %7 : vector<32x1xf32> to vector<32x256xf32>
    %9 = arith.addf %6, %8 : vector<32x256xf32>
    %cst_7 = arith.constant 0.000000e+00 : f32
    %10 = vector.broadcast %cst_7 : f32 to vector<32x256xf32>
    %11 = arith.maximumf %9, %10 : vector<32x256xf32>
    %c0_8 = arith.constant 0 : index
    %c0_9 = arith.constant 0 : index
    %12 = vector.load %arg5[%c0_8, %c0_9] : memref<8x32xbf16, #tpu.memory_space<vmem>>, vector<8x32xbf16>
    %13 = arith.truncf %11 : vector<32x256xf32> to vector<32x256xbf16>
    %cst_10 = arith.constant dense<0.000000e+00> : vector<8x256xf32>
    %14 = tpu.matmul %12, %13, %cst_10 {dimension_numbers = #tpu.dot_dimension_numbers<[1], [0], [0], [1], [0, 0, 1, 1], [], []>} : vector<8x32xbf16>, vector<32x256xbf16>, vector<8x256xf32> -> vector<8x256xf32>
    %c0_11 = arith.constant 0 : index
    %c0_12 = arith.constant 0 : index
    %15 = vector.load %arg6[%c0_11, %c0_12] : memref<8x1xf32, #tpu.memory_space<vmem>>, vector<8x1xf32>
    %16 = vector.broadcast %15 : vector<8x1xf32> to vector<8x256xf32>
    %17 = arith.addf %14, %16 : vector<8x256xf32>
    %c0_13 = arith.constant 0 : index
    %c0_14 = arith.constant 0 : index
    %c0_15 = arith.constant 0 : index
    %18 = vector.load %arg9[%c0_13, %c0_14, %c0_15] : memref<1x8x256xf32, #tpu.memory_space<vmem>>, vector<1x8x256xf32>
    %19 = vector.shape_cast %18 : vector<1x8x256xf32> to vector<8x256xf32>
    %20 = vector.shape_cast %17 : vector<8x256xf32> to vector<1x8x256xf32>
    tpu.vector_store %arg9[%c0_13, %c0_14, %c0_15], %20 {strides = array<i32>} : memref<1x8x256xf32, #tpu.memory_space<vmem>>, vector<1x8x256xf32>,
    %c0_16 = arith.constant 0 : index
    %c0_17 = arith.constant 0 : index
    %21 = vector.load %arg7[%c0_16, %c0_17] : memref<32x8xbf16, #tpu.memory_space<vmem>>, vector<32x8xbf16>
    %22 = arith.truncf %17 : vector<8x256xf32> to vector<8x256xbf16>
    %cst_18 = arith.constant dense<0.000000e+00> : vector<32x256xf32>
    %23 = tpu.matmul %21, %22, %cst_18 {dimension_numbers = #tpu.dot_dimension_numbers<[1], [0], [0], [1], [0, 0, 1, 1], [], []>} : vector<32x8xbf16>, vector<8x256xbf16>, vector<32x256xf32> -> vector<32x256xf32>
    %c0_19 = arith.constant 0 : index
    %c0_20 = arith.constant 0 : index
    %24 = vector.load %arg8[%c0_19, %c0_20] : memref<32x1xf32, #tpu.memory_space<vmem>>, vector<32x1xf32>
    %25 = vector.broadcast %24 : vector<32x1xf32> to vector<32x256xf32>
    %26 = arith.addf %23, %25 : vector<32x256xf32>
    %c0_21 = arith.constant 0 : index
    %c0_22 = arith.constant 0 : index
    %c0_23 = arith.constant 0 : index
    %27 = vector.load %arg10[%c0_21, %c0_22, %c0_23] : memref<1x32x1xf32, #tpu.memory_space<vmem>>, vector<1x32x1xf32>
    %cst_24 = arith.constant dense<0.000000e+00> : vector<32xf32>
    %28 = vector.multi_reduction <add>, %26, %cst_24 [1] : vector<32x256xf32> to vector<32xf32>
    %29 = vector.shape_cast %28 : vector<32xf32> to vector<32x1xf32>
    %30 = vector.shape_cast %29 : vector<32x1xf32> to vector<1x32x1xf32>
    %31 = arith.addf %27, %30 : vector<1x32x1xf32>
    %c0_25 = arith.constant 0 : index
    %c0_26 = arith.constant 0 : index
    %c0_27 = arith.constant 0 : index
    %32 = vector.load %arg10[%c0_25, %c0_26, %c0_27] : memref<1x32x1xf32, #tpu.memory_space<vmem>>, vector<1x32x1xf32>
    tpu.vector_store %arg10[%c0_25, %c0_26, %c0_27], %31 {strides = array<i32>} : memref<1x32x1xf32, #tpu.memory_space<vmem>>, vector<1x32x1xf32>,
    %c0_28 = arith.constant 0 : index
    %c0_29 = arith.constant 0 : index
    %c0_30 = arith.constant 0 : index
    %33 = vector.load %arg11[%c0_28, %c0_29, %c0_30] : memref<1x32x1xf32, #tpu.memory_space<vmem>>, vector<1x32x1xf32>
    %34 = arith.mulf %26, %26 : vector<32x256xf32>
    %cst_31 = arith.constant dense<0.000000e+00> : vector<32xf32>
    %35 = vector.multi_reduction <add>, %34, %cst_31 [1] : vector<32x256xf32> to vector<32xf32>
    %36 = vector.shape_cast %35 : vector<32xf32> to vector<32x1xf32>
    %37 = vector.shape_cast %36 : vector<32x1xf32> to vector<1x32x1xf32>
    %38 = arith.addf %33, %37 : vector<1x32x1xf32>
    %c0_32 = arith.constant 0 : index
    %c0_33 = arith.constant 0 : index
    %c0_34 = arith.constant 0 : index
    %39 = vector.load %arg11[%c0_32, %c0_33, %c0_34] : memref<1x32x1xf32, #tpu.memory_space<vmem>>, vector<1x32x1xf32>
    tpu.vector_store %arg11[%c0_32, %c0_33, %c0_34], %38 {strides = array<i32>} : memref<1x32x1xf32, #tpu.memory_space<vmem>>, vector<1x32x1xf32>,
    return
  }
  func.func @transform_0(%arg0: i32, %arg1: i32) -> (i32, i32, i32) {
    %c0_i32 = arith.constant 0 : i32
    %c0_i32_0 = arith.constant 0 : i32
    return %arg0, %c0_i32, %arg1 : i32, i32, i32
  }
  func.func @transform_1(%arg0: i32, %arg1: i32) -> (i32, i32) {
    %c0_i32 = arith.constant 0 : i32
    %c0_i32_0 = arith.constant 0 : i32
    %c0_i32_1 = arith.constant 0 : i32
    return %c0_i32, %c0_i32_0 : i32, i32
  }
  func.func @transform_2(%arg0: i32, %arg1: i32) -> (i32, i32) {
    %c0_i32 = arith.constant 0 : i32
    %c0_i32_0 = arith.constant 0 : i32
    %c0_i32_1 = arith.constant 0 : i32
    return %c0_i32, %c0_i32_0 : i32, i32
  }
  func.func @transform_3(%arg0: i32, %arg1: i32) -> (i32, i32) {
    %c0_i32 = arith.constant 0 : i32
    %c0_i32_0 = arith.constant 0 : i32
    %c0_i32_1 = arith.constant 0 : i32
    return %c0_i32, %c0_i32_0 : i32, i32
  }
  func.func @transform_4(%arg0: i32, %arg1: i32) -> (i32, i32) {
    %c0_i32 = arith.constant 0 : i32
    %c0_i32_0 = arith.constant 0 : i32
    %c0_i32_1 = arith.constant 0 : i32
    return %c0_i32, %c0_i32_0 : i32, i32
  }
  func.func @transform_5(%arg0: i32, %arg1: i32) -> (i32, i32) {
    %c0_i32 = arith.constant 0 : i32
    %c0_i32_0 = arith.constant 0 : i32
    %c0_i32_1 = arith.constant 0 : i32
    return %c0_i32, %c0_i32_0 : i32, i32
  }
  func.func @transform_6(%arg0: i32, %arg1: i32) -> (i32, i32) {
    %c0_i32 = arith.constant 0 : i32
    %c0_i32_0 = arith.constant 0 : i32
    %c0_i32_1 = arith.constant 0 : i32
    return %c0_i32, %c0_i32_0 : i32, i32
  }
  func.func @transform_7(%arg0: i32, %arg1: i32) -> (i32, i32, i32) {
    %c0_i32 = arith.constant 0 : i32
    %c0_i32_0 = arith.constant 0 : i32
    return %arg0, %c0_i32, %arg1 : i32, i32, i32
  }
  func.func @transform_8(%arg0: i32, %arg1: i32) -> (i32, i32, i32) {
    %c0_i32 = arith.constant 0 : i32
    %c0_i32_0 = arith.constant 0 : i32
    %c0_i32_1 = arith.constant 0 : i32
    return %arg0, %c0_i32, %c0_i32_0 : i32, i32, i32
  }
  func.func @transform_9(%arg0: i32, %arg1: i32) -> (i32, i32, i32) {
    %c0_i32 = arith.constant 0 : i32
    %c0_i32_0 = arith.constant 0 : i32
    %c0_i32_1 = arith.constant 0 : i32
    return %arg0, %c0_i32, %c0_i32_0 : i32, i32, i32
  }
}

</mosaic_0001>

<bundles_post_ra>
// kernel: structural_byol_forward.15
= control target key start
LH: loop header
LB: loop body
LE: loop exit
PB: predicated region body
PF: predicated region fallthrough
CT: control target
= control target key end

     0   :  { %s1136_s13 = smov 0   ;;  %s1138_s14 = smov 0   ;;  %s1255_s0 = inlined_call_operand.vmem [shape: f32[2,8,256], index: 0, kind: input, shape index: {}]   ;;  %s1256_s1 = inlined_call_operand.vmem [shape: bf16[2,16,256], index: 1, kind: input, shape index: {}]   ;;  %s1257_s2 = inlined_call_operand.vmem [shape: bf16[32,16], index: 2, kind: input, shape index: {}]   ;;  %s1258_s3 = inlined_call_operand.vmem [shape: f32[32,1], index: 3, kind: input, shape index: {}]   ;;  %s1259_s4 = inlined_call_operand.vmem [shape: bf16[8,32], index: 4, kind: input, shape index: {}]   ;;  %s1260_s5 = inlined_call_operand.vmem [shape: f32[8,1], index: 5, kind: input, shape index: {}]   ;;  %s1261_s6 = inlined_call_operand.vmem [shape: bf16[32,8], index: 6, kind: input, shape index: {}]   ;;  %s1262_s7 = inlined_call_operand.vmem [shape: f32[32,1], index: 7, kind: input, shape index: {}]   ;;  %s1263_s8 = inlined_call_operand.vmem [shape: bf16[8,32], index: 8, kind: input, shape index: {}]   ;;  %s1264_s9 = inlined_call_operand.vmem [shape: f32[8,1], index: 9, kind: input, shape index: {}]   ;;  %s1265_s10 = inlined_call_operand.vmem [shape: f32[2,1,256], index: 10, kind: output, shape index: {}]  }
   0x1   :  { %s1140_s15 = smov 0  }
   0x2 LB: > { %s32_s16 = sadd.s32 1, %s1074_s14  ;;  %p964_p0 = scmp.ge.s32.totalorder %s1078_s15, 1  ;;  %s1078_s15 = sphi %s1140_s15, %s20_s15   ;;  %s1074_s14 = sphi %s1138_s14, %s1267_s14   ;;  %s1070_s13 = sphi %s1136_s13, %s1266_s13  }
   0x3   : > { %p34_p1 = scmp.ge.s32.totalorder %s32_s16, 2  ;;  %p350_p2 = scmp.lt.s32.totalorder %s1078_s15, 3 }
   0x5   : > { %s1269_s16 = smov (%p34_p1, %s32_s16), 0  ;;  %p351_p3 = pnand %p964_p0, %p350_p2 }
   0x6   : > { %p405_p4 = scmp.lt.s32.totalorder (!%p351_p3), %s1070_s13, 1 }
   0x7   : > { %354 = sbr.rel (%p351_p3) target bundleno = 564 (0x234), region = 60 }
   0xc   : > { %v444_v0 = vld [vmem:[%s1262_s7 + $0x10] sm:$0xff]  ;;  %v1080_v1 = vmov 0   ;;  %v442_v2 = vld [vmem:[%s1262_s7] sm:$0xff]  ;;  %s1271_s13 = smov (!%p405_p4, %s1070_s13), 1  ;;  %vm483_vm0 = vcmask 1043456   ;;  %v445_v7 = vld [vmem:[%s1262_s7 + $0x18] sm:$0xff] }
   0xd   : > { %1041 = vset.pattern.permute.xlu0 %v1080_v1  ;;  %1042 = vset.pattern.permute.xlu1 %v1080_v1  ;;  %s1008_s21 = sshll.u32 %s1271_s13, 4  ;;  %v443_v8 = vld [vmem:[%s1262_s7 + $0x8] sm:$0xff]  ;;  %v1010_v11 = vld [vmem:[%s1261_s6] sm:$0xff]  ;;  %vm476_vm1 = vcmask 64512   ;;  %v585_v25 = vld [vmem:[%s1258_s3 + $0x10] sm:$0xff]  ;;  %vm547_vm2 = vcmask 261120  }
   0xe   : > { %458 = vperm.xlu0 %1041, %v444_v0   ;;  %448 = vperm.xlu1 %1042, %v442_v2   ;;  %s412_s24 = scalar_lea.vmem %s1255_s0, %s1008_s21  ;;  %v583_v12 = vld [vmem:[%s1258_s3] sm:$0xff]  ;;  %v584_v13 = vld [vmem:[%s1258_s3 + $0x8] sm:$0xff]  ;;  %s422_s28 = scalar_lea.vmem %s1256_s1, %s1008_s21  ;;  %v586_v56 = vld [vmem:[%s1258_s3 + $0x18] sm:$0xff]  ;;  %vm627_vm3 = vcmask 130048  }
   0xf   : > { %1043 = vset.pattern.permute.xlu2 %v1080_v1  ;;  %v434_v3 = vld [vmem:[%s412_s24] sm:$0xff]  ;;  %v435_v4 = vld [vmem:[%s412_s24 + $0x8] sm:$0xff]  ;;  %s969_s25 = sshll.u32 %s1271_s13, 1 }
  0x10   : > { %v436_v5 = vpack.c.bf16 %v434_v3, %v434_v3  ;;  %v437_v6 = vpack.c.bf16 %v435_v4, %v435_v4  ;;  %v685_v14 = vld [vmem:[%s1260_s5] sm:$0xff]  ;;  %v1011_v15 = vld [vmem:[%s1261_s6 + $0x8] sm:$0xff]  ;;  %599 = vperm.xlu2 %1043, %v585_v25  }
  0x11   : > { %v994_v41 = vld [vmem:[%s422_s28] sm:$0xf]  ;;  %v1013_v42 = vld [vmem:[%s422_s28 + $0x4] sm:$0xf0]  ;;  %v1012_v47 = vld [vmem:[%s422_s28 + $0x4] sm:$0xf] }
  0x12   : > { %v485_v9 = vsel %vm483_vm0, %v436_v5, 0  ;;  %v488_v10 = vsel %vm483_vm0, %v437_v6, 0  ;;  %v996_v48 = vld [vmem:[%s422_s28 + $0x8] sm:$0xf0]  ;;  %v995_v51 = vor.u32 %v1013_v42, %v994_v41  ;;  %v536_v55 = vld [vmem:[%s1263_s8] sm:$0xf]  ;;  %s431_s28 = scalar_lea.vmem %s1265_s10, %s969_s25 }
  0x13   : > { %497 = vmatpush.bf16.msra.mxu0 %v485_v9  ;;  %516 = vmatpush.bf16.msra.mxu1 %v488_v10  ;;  %v999_v52 = vor.u32 %v1012_v47, %v996_v48  ;;  %v541_v57 = vld [vmem:[%s1264_s9] sm:$0xff]  ;;  %v1015_v59 = vld [vmem:[%s1257_s2 + $0x8] sm:$0xff] }
  0x14   : > { %v1014_v58 = vld [vmem:[%s1257_s2] sm:$0xff] }
  0x16   : > { %463 = vperm.xlu0 %1041, %v445_v7   ;;  %453 = vperm.xlu1 %1042, %v443_v8  }
  0x17   : > { %978 = vmatmul.msk.bf16.vlgmr.msra.gmra.mxu0 %vm476_vm1, %v1010_v11  ;;  %980 = vmatmul.msk.bf16.vlgmr.msra.gmra.mxu1 %vm476_vm1, %v1010_v11 }
  0x18   : > { %604 = vperm.xlu2 %1043, %v586_v56  }
  0x1e   : > { %589 = vperm.xlu0 %1041, %v583_v12   ;;  %594 = vperm.xlu1 %1042, %v584_v13  }
  0x20   : > { %544 = vperm.xlu2 %1043, %v541_v57  }
  0x26   : > { %688 = vperm.xlu0 %1041, %v685_v14  }
  0x27   : > { %979 = vmatmul.msk.bf16.gmra.mxu0 %vm476_vm1, %v1011_v15  ;;  %981 = vmatmul.msk.bf16.gmra.mxu1 %vm476_vm1, %v1011_v15 }
  0x6a   : > { %v600_v4 = vpop.permute.xlu2 %599 }
  0x72   : > { %v605_v8 = vpop.permute.xlu2 %604 }
  0x80   : > { %v449_v20 = vpop.permute.xlu1 %448  ;;  %v459_v21 = vpop.permute.xlu0 %458 }
  0x88   : > { %v454_v24 = vpop.permute.xlu1 %453  ;;  %v464_v26 = vpop.permute.xlu0 %463 }
  0x90   : > { %v595_v7 = vpop.permute.xlu1 %594  ;;  %v590_v13 = vpop.permute.xlu0 %589 }
  0x94   : > { %v499_v16 = vpop.f32.mrf.mxu0  ;;  %v518_v17 = vpop.f32.mrf.mxu1 }
  0x95   : > { %v500_v35 = vadd.f32 %v499_v16, %v449_v20  ;;  %v519_v36 = vadd.f32 %v518_v17, %v449_v20 }
  0x97   : > { %v528_v49 = vmax.f32 %v500_v35, 0.0  ;;  %v529_v50 = vmax.f32 %v519_v36, 0.0 }
  0x9c   : > { %v501_v18 = vpop.f32.mrf.mxu0  ;;  %v520_v19 = vpop.f32.mrf.mxu1 }
  0x9d   : > { %v502_v31 = vadd.f32 %v501_v18, %v454_v24  ;;  %v521_v32 = vadd.f32 %v520_v19, %v454_v24 }
  0x9f   : > { %v530_v43 = vmax.f32 %v502_v31, 0.0  ;;  %v531_v44 = vmax.f32 %v521_v32, 0.0  ;;  %v680_v32 = vld [vmem:[%s1259_s4] sm:$0xf] }
  0xa1   : > { %v537_v53 = vpack.c.bf16 %v530_v43, %v528_v49  ;;  %v538_v54 = vpack.c.bf16 %v531_v44, %v529_v50  ;;  %v689_v50 = vpop.permute.xlu0 %688 }
  0xa4   : > { %v504_v22 = vpop.f32.mrf.mxu0  ;;  %v523_v23 = vpop.f32.mrf.mxu1 }
  0xa5   : > { %v505_v27 = vadd.f32 %v504_v22, %v459_v21  ;;  %v524_v28 = vadd.f32 %v523_v23, %v459_v21 }
  0xa7   : > { %v532_v37 = vmax.f32 %v505_v27, 0.0  ;;  %v533_v38 = vmax.f32 %v524_v28, 0.0 }
  0xac   : > { %v506_v29 = vpop.f32.mrf.mxu0  ;;  %v525_v30 = vpop.f32.mrf.mxu1 }
  0xad   : > { %v507_v33 = vadd.f32 %v506_v29, %v464_v26  ;;  %v526_v34 = vadd.f32 %v525_v30, %v464_v26 }
  0xaf   : > { %v534_v39 = vmax.f32 %v507_v33, 0.0  ;;  %v535_v40 = vmax.f32 %v526_v34, 0.0  ;;  %v545_v33 = vpop.permute.xlu2 %544 }
  0xb1   : > { %v539_v45 = vpack.c.bf16 %v534_v39, %v532_v37  ;;  %v540_v46 = vpack.c.bf16 %v535_v40, %v533_v38 }
  0xb3   : > { %557 = vmatpush.bf16.msra.mxu2 %v539_v45  ;;  %570 = vmatpush.bf16.msra.mxu3 %v540_v46 }
  0xb7   : > { %558 = vmatpush.bf16.msra.mxu2 %v537_v53  ;;  %571 = vmatpush.bf16.msra.mxu3 %v538_v54 }
  0xba   : > { %982 = vmatmul.msk.bf16.vlgmr.msra.gmra.mxu2 %vm547_vm2, %v536_v55  ;;  %983 = vmatmul.msk.bf16.vlgmr.msra.gmra.mxu3 %vm547_vm2, %v536_v55 }
  0xbb   : > { %641 = vmatpush.bf16.msrb.mxu2 %v995_v51  ;;  %660 = vmatpush.bf16.msrb.mxu3 %v999_v52 }
  0xca   : > { %1000 = vmatmul.msk.bf16.vlgmr.msrb.gmra.mxu2 %vm627_vm3, %v1014_v58  ;;  %1002 = vmatmul.msk.bf16.vlgmr.msrb.gmra.mxu3 %vm627_vm3, %v1014_v58 }
  0xda   : > { %1001 = vmatmul.msk.bf16.gmra.mxu2 %vm627_vm3, %v1015_v59  ;;  %1003 = vmatmul.msk.bf16.gmra.mxu3 %vm627_vm3, %v1015_v59 }
 0x13d   : > { %v560_v60 = vpop.f32.mrf.mxu2  ;;  %v573_v61 = vpop.f32.mrf.mxu3 }
 0x13e   : > { %v561_v34 = vadd.f32 %v560_v60, %v545_v33  ;;  %v1219_v35 = vadd.f32 %v573_v61, %v545_v33 }
 0x140   : > { %v720_v36 = vmul.f32 %v561_v34, %v561_v34  ;;  %v721_v37 = vmul.f32 %v1219_v35, %v1219_v35 }
 0x142   : > { %v722_v38 = vrot.slane %v720_v36, 4  ;;  %v728_v39 = vrot.slane %v721_v37, 4 }
 0x144   : > { %v723_v40 = vadd.f32 %v722_v38, %v720_v36  ;;  %v729_v41 = vadd.f32 %v728_v39, %v721_v37 }
 0x145   : > { %v562_v62 = vpop.f32.mrf.mxu2  ;;  %v575_v63 = vpop.f32.mrf.mxu3 }
 0x146   : > { %v724_v42 = vrot.slane %v723_v40, 2  ;;  %v730_v43 = vrot.slane %v729_v41, 2 }
 0x148   : > { %v725_v44 = vadd.f32 %v724_v42, %v723_v40  ;;  %v731_v45 = vadd.f32 %v730_v43, %v729_v41 }
 0x14a   : > { %v726_v46 = vrot.slane %v725_v44, 1  ;;  %v732_v47 = vrot.slane %v731_v45, 1 }
 0x14c   : > { %v1223_v48 = vadd.f32 %v726_v46, %v725_v44  ;;  %v1225_v49 = vadd.f32 %v732_v47, %v731_v45 }
 0x14d   : > { %v643_v0 = vpop.f32.mrf.mxu2  ;;  %v662_v1 = vpop.f32.mrf.mxu3 }
 0x14e   : > { %v644_v18 = vadd.f32 %v643_v0, %v590_v13  ;;  %v663_v19 = vadd.f32 %v662_v1, %v590_v13  ;;  %1044 = vrsqrt.f32 %v1223_v48  ;;  %vm741_vm4 = vcmp.eq.f32.partialorder %v1223_v48, inf }
 0x14f   : > { %1046 = vrsqrt.f32 %v1225_v49  ;;  %vm753_vm5 = vcmp.eq.f32.partialorder %v1225_v49, inf  ;;  %v744_v38 = vand.u32 2147483648, %v1223_v48  ;;  %vm743_vm6 = vcmp.eq.f32.partialorder %v1223_v48, 0.0 }
 0x150   : > { %v672_v28 = vmax.f32 %v644_v18, 0.0  ;;  %v673_v29 = vmax.f32 %v663_v19, 0.0  ;;  %vm755_vm7 = vcmp.eq.f32.partialorder %v1225_v49, 0.0 }
 0x154   : > { %v1045_v55 = vpop.eup %1044 }
 0x155   : > { %v645_v2 = vpop.f32.mrf.mxu2  ;;  %v664_v3 = vpop.f32.mrf.mxu3  ;;  %v735_v61 = vmul.f32 %v1045_v55, %v1223_v48 }
 0x156   : > { %v646_v14 = vadd.f32 %v645_v2, %v595_v7  ;;  %v665_v15 = vadd.f32 %v664_v3, %v595_v7  ;;  %v1047_v58 = vpop.eup %1046 }
 0x157   : > { %v747_v62 = vmul.f32 %v1047_v58, %v1225_v49 }
 0x158   : > { %v674_v24 = vmax.f32 %v646_v14, 0.0  ;;  %v675_v25 = vmax.f32 %v665_v15, 0.0 }
 0x15a   : > { %v681_v30 = vpack.c.bf16 %v674_v24, %v672_v28  ;;  %v682_v31 = vpack.c.bf16 %v675_v25, %v673_v29 }
 0x15d   : > { %v648_v5 = vpop.f32.mrf.mxu2  ;;  %v667_v6 = vpop.f32.mrf.mxu3 }
 0x15e   : > { %v649_v9 = vadd.f32 %v648_v5, %v600_v4  ;;  %v668_v10 = vadd.f32 %v667_v6, %v600_v4  ;;  %v736_v5 = vmul.f32 %v1045_v55, %v735_v61  ;;  %v748_v6 = vmul.f32 %v1047_v58, %v747_v62 }
 0x160   : > { %v676_v20 = vmax.f32 %v649_v9, 0.0  ;;  %v677_v21 = vmax.f32 %v668_v10, 0.0 }
 0x165   : > { %v650_v11 = vpop.f32.mrf.mxu2  ;;  %v669_v12 = vpop.f32.mrf.mxu3 }
 0x166   : > { %v651_v16 = vadd.f32 %v650_v11, %v605_v8  ;;  %v670_v17 = vadd.f32 %v669_v12, %v605_v8  ;;  %v737_v11 = vmul.f32 0.5, %v736_v5  ;;  %v749_v12 = vmul.f32 0.5, %v748_v6 }
 0x168   : > { %v678_v22 = vmax.f32 %v651_v16, 0.0  ;;  %v679_v23 = vmax.f32 %v670_v17, 0.0  ;;  %v738_v15 = vsub.f32 1.5, %v737_v11  ;;  %v750_v16 = vsub.f32 1.5, %v749_v12 }
 0x16a   : > { %v683_v26 = vpack.c.bf16 %v678_v22, %v676_v20  ;;  %v684_v27 = vpack.c.bf16 %v679_v23, %v677_v21  ;;  %v739_v18 = vmul.f32 %v1045_v55, %v738_v15  ;;  %v751_v19 = vmul.f32 %v1047_v58, %v750_v16 }
 0x16c   : > { %700 = vmatpush.bf16.msrb.mxu0 %v683_v26  ;;  %713 = vmatpush.bf16.msrb.mxu1 %v684_v27  ;;  %v740_v24 = vmul.f32 %v739_v18, %v1223_v48  ;;  %v752_v25 = vmul.f32 %v751_v19, %v1225_v49 }
 0x16e   : > { %v754_v36 = vsel %vm753_vm5, %v1225_v49, %v752_v25 }
 0x170   : > { %701 = vmatpush.bf16.msrb.mxu0 %v681_v30  ;;  %714 = vmatpush.bf16.msrb.mxu1 %v682_v31 }
 0x173   : > { %1004 = vmatmul.msk.bf16.vlgmr.msrb.gmra.mxu0 %vm547_vm2, %v680_v32  ;;  %1005 = vmatmul.msk.bf16.vlgmr.msrb.gmra.mxu1 %vm547_vm2, %v680_v32  ;;  %v742_v32 = vsel %vm741_vm4, %v1223_v48, %v740_v24  ;;  %vm853_vm4 = vcmask 1040384  }
 0x174   : > { %v745_v41 = vsel %vm743_vm6, %v744_v38, %v742_v32 }
 0x1f0   : > { %v703_v51 = vpop.f32.mrf.mxu0  ;;  %v716_v52 = vpop.f32.mrf.mxu1 }
 0x1f1   : > { %v704_v53 = vadd.f32 %v703_v51, %v689_v50  ;;  %v717_v54 = vadd.f32 %v716_v52, %v689_v50 }
 0x1f3   : > { %v760_v56 = vmul.f32 %v704_v53, %v704_v53  ;;  %v761_v57 = vmul.f32 %v717_v54, %v717_v54  ;;  %v800_v26 = vmul.f32 %v704_v53, %v561_v34  ;;  %v801_v31 = vmul.f32 %v717_v54, %v1219_v35 }
 0x1f4   : > { %v756_v34 = vand.u32 2147483648, %v1225_v49  ;;  %v758_v53 = vmax.f32 %v745_v41, 1e-12 }
 0x1f5   : > { %v762_v59 = vrot.slane %v760_v56, 4  ;;  %v768_v60 = vrot.slane %v761_v57, 4  ;;  %v802_v33 = vrot.slane %v800_v26, 4  ;;  %v808_v35 = vrot.slane %v801_v31, 4 }
 0x1f6   : > { %v757_v43 = vsel %vm755_vm7, %v756_v34, %v754_v36 }
 0x1f7   : > { %v763_v63 = vadd.f32 %v762_v59, %v760_v56  ;;  %v769_v0 = vadd.f32 %v768_v60, %v761_v57  ;;  %v803_v45 = vadd.f32 %v802_v33, %v800_v26  ;;  %v809_v49 = vadd.f32 %v808_v35, %v801_v31 }
 0x1f8   : > { %v718_v1 = vpop.f32.mrf.mxu1  ;;  %v705_v2 = vpop.f32.mrf.mxu0  ;;  %v759_v55 = vmax.f32 %v757_v43, 1e-12 }
 0x1f9   : > { %v764_v3 = vrot.slane %v763_v63, 2  ;;  %v770_v4 = vrot.slane %v769_v0, 2  ;;  %v804_v57 = vrot.slane %v803_v45, 2  ;;  %v810_v60 = vrot.slane %v809_v49, 2 }
 0x1fb   : > { %v765_v7 = vadd.f32 %v764_v3, %v763_v63  ;;  %v771_v8 = vadd.f32 %v770_v4, %v769_v0  ;;  %v805_v61 = vadd.f32 %v804_v57, %v803_v45  ;;  %v811_v62 = vadd.f32 %v810_v60, %v809_v49 }
 0x1fd   : > { %v766_v9 = vrot.slane %v765_v7, 1  ;;  %v772_v10 = vrot.slane %v771_v8, 1  ;;  %v806_v0 = vrot.slane %v805_v61, 1  ;;  %v812_v3 = vrot.slane %v811_v62, 1 }
 0x1ff   : > { %v767_v13 = vadd.f32 %v766_v9, %v765_v7  ;;  %v773_v14 = vadd.f32 %v772_v10, %v771_v8  ;;  %v807_v6 = vadd.f32 %v806_v0, %v805_v61  ;;  %v813_v12 = vadd.f32 %v812_v3, %v811_v62 }
 0x201   : > { %1048 = vrsqrt.f32 %v767_v13  ;;  %vm781_vm8 = vcmp.eq.f32.partialorder %v767_v13, inf  ;;  %v784_v44 = vand.u32 2147483648, %v767_v13  ;;  %vm783_vm9 = vcmp.eq.f32.partialorder %v767_v13, 0.0 }
 0x202   : > { %1050 = vrsqrt.f32 %v773_v14  ;;  %vm793_vm10 = vcmp.eq.f32.partialorder %v773_v14, inf  ;;  %v796_v50 = vand.u32 2147483648, %v773_v14  ;;  %vm795_vm11 = vcmp.eq.f32.partialorder %v773_v14, 0.0 }
 0x203   : > { %v814_v18 = vmul.f32 2.0, %v807_v6 }
 0x207   : > { %v1049_v17 = vpop.eup %1048 }
 0x208   : > { %v1051_v20 = vpop.eup %1050  ;;  %v775_v21 = vmul.f32 %v1049_v17, %v767_v13 }
 0x209   : > { %v787_v22 = vmul.f32 %v1051_v20, %v773_v14 }
 0x20a   : > { %v776_v23 = vmul.f32 %v1049_v17, %v775_v21 }
 0x20b   : > { %v788_v27 = vmul.f32 %v1051_v20, %v787_v22  ;;  %v815_v22 = vmul.f32 2.0, %v813_v12 }
 0x20c   : > { %v777_v28 = vmul.f32 0.5, %v776_v23 }
 0x20d   : > { %v789_v29 = vmul.f32 0.5, %v788_v27  ;;  %v856_v27 = vlaneseq }
 0x20e   : > { %v778_v30 = vsub.f32 1.5, %v777_v28 }
 0x20f   : > { %v790_v37 = vsub.f32 1.5, %v789_v29  ;;  %vm858_vm5 = vcmp.lt.s32.totalorder %v856_v27, 256 }
 0x210   : > { %v779_v39 = vmul.f32 %v1049_v17, %v778_v30 }
 0x211   : > { %v791_v40 = vmul.f32 %v1051_v20, %v790_v37 }
 0x212   : > { %v780_v42 = vmul.f32 %v779_v39, %v767_v13 }
 0x213   : > { %v792_v46 = vmul.f32 %v791_v40, %v773_v14 }
 0x214   : > { %v782_v47 = vsel %vm781_vm8, %v767_v13, %v780_v42 }
 0x215   : > { %v785_v51 = vsel %vm783_vm9, %v784_v44, %v782_v47  ;;  %v794_v52 = vsel %vm793_vm10, %v773_v14, %v792_v46 }
 0x216   : > { %v798_v48 = vmax.f32 %v785_v51, 1e-12  ;;  %v797_v54 = vsel %vm795_vm11, %v796_v50, %v794_v52 }
 0x217   : > { %v799_v56 = vmax.f32 %v797_v54, 1e-12 }
 0x218   : > { %v816_v58 = vmul.f32 %v798_v48, %v758_v53 }
 0x219   : > { %v817_v59 = vmul.f32 %v799_v56, %v759_v55 }
 0x21a   : > { %1052 = vrcp.f32 %v816_v58  ;;  %v829_v7 = vand.u32 2147483648, %v816_v58  ;;  %v827_v10 = vand.u32 2147483647, %v816_v58  ;;  %vm823_vm14 = vweird.f32 %v816_v58 }
 0x21b   : > { %1054 = vrcp.f32 %v817_v59  ;;  %v844_v11 = vand.u32 2147483648, %v817_v59  ;;  %v842_v14 = vand.u32 2147483647, %v817_v59  ;;  %vm838_vm0 = vweird.f32 %v817_v59 }
 0x21c   : > { %v830_v16 = vor.u32 1.1754944e-38, %v829_v7  ;;  %vm828_vm1 = vcmp.eq.f32.partialorder %v827_v10, 8.507059e+37 }
 0x21d   : > { %v845_v20 = vor.u32 1.1754944e-38, %v844_v11  ;;  %vm843_vm3 = vcmp.eq.f32.partialorder %v842_v14, 8.507059e+37 }
 0x220   : > { %v1053_v63 = vpop.eup %1052 }
 0x221   : > { %v1055_v1 = vpop.eup %1054  ;;  %v819_v2 = vmul.f32 %v1053_v63, %v816_v58  ;;  %vm824_vm12 = vweird.f32 %v1053_v63 }
 0x222   : > { %v834_v4 = vmul.f32 %v1055_v1, %v817_v59  ;;  %vm839_vm13 = vweird.f32 %v1055_v1  ;;  %vm825_vm15 = vmor %vm823_vm14, %vm824_vm12 }
 0x223   : > { %v820_v5 = vsub.f32 1.0, %v819_v2  ;;  %vm840_vm2 = vmor %vm838_vm0, %vm839_vm13 }
 0x224   : > { %v835_v8 = vsub.f32 1.0, %v834_v4 }
 0x225   : > { %v821_v9 = vmul.f32 %v1053_v63, %v820_v5 }
 0x226   : > { %v836_v13 = vmul.f32 %v1055_v1, %v835_v8 }
 0x227   : > { %v822_v15 = vadd.f32 %v1053_v63, %v821_v9 }
 0x228   : > { %v837_v17 = vadd.f32 %v1055_v1, %v836_v13 }
 0x229   : > { %v826_v19 = vsel %vm825_vm15, %v1053_v63, %v822_v15 }
 0x22a   : > { %v831_v21 = vsel %vm828_vm1, %v830_v16, %v826_v19  ;;  %v841_v23 = vsel %vm840_vm2, %v1055_v1, %v837_v17 }
 0x22b   : > { %v846_v24 = vsel %vm843_vm3, %v845_v20, %v841_v23  ;;  %v832_v25 = vmul.f32 %v831_v21, %v814_v18 }
 0x22c   : > { %v847_v26 = vmul.f32 %v846_v24, %v815_v22 }
 0x22d   : > { %v848_v29 = vsub.f32 2.0, %v832_v25 }
 0x22e   : > { %v849_v28 = vsub.f32 2.0, %v847_v26 }
 0x230   : > { %v852_v30 = vrot.slane %v849_v28, 7 }
 0x232   : > { %v854_v31 = vsel %vm853_vm4, %v848_v29, %v852_v30 }
 0x233   : > { %860 = vst.msk [vmem:[%s431_s28] sm:$0x3] %vm858_vm5, %v854_v31 }
 0x234 PF: > { %s20_s15 = sadd.s32 1, %s1078_s15   ;;  %s1266_s13 = smov %s1074_s14 }
 0x235   : > { %p17_p5 = scmp.ge.s32.totalorder %s20_s15, 4   ;;  %s1267_s14 = smov %s1269_s16 }
 0x237   :  { %19 = sbr.rel (!%p17_p5) target bundleno = 2 (0x2), region = 93 }

// kernel: structural_byol_forward.11
= control target key start
LH: loop header
LB: loop body
LE: loop exit
PB: predicated region body
PF: predicated region fallthrough
CT: control target
= control target key end

     0   :  { %s1023_s30 = smov 0   ;;  %s1025_s10 = smov 0   ;;  %s1156_s0 = inlined_call_operand.vmem [shape: bf16[2,16,256], index: 0, kind: input, shape index: {}]   ;;  %s1157_s1 = inlined_call_operand.vmem [shape: bf16[32,16], index: 1, kind: input, shape index: {}]   ;;  %s1158_s2 = inlined_call_operand.vmem [shape: f32[32,1], index: 2, kind: input, shape index: {}]   ;;  %s1159_s3 = inlined_call_operand.vmem [shape: bf16[8,32], index: 3, kind: input, shape index: {}]   ;;  %s1160_s4 = inlined_call_operand.vmem [shape: f32[8,1], index: 4, kind: input, shape index: {}]   ;;  %s1161_s5 = inlined_call_operand.vmem [shape: bf16[32,8], index: 5, kind: input, shape index: {}]   ;;  %s1162_s6 = inlined_call_operand.vmem [shape: f32[32,1], index: 6, kind: input, shape index: {}]   ;;  %s1163_s7 = inlined_call_operand.vmem [shape: f32[2,8,256], index: 7, kind: output, shape index: {0}]   ;;  %s1164_s8 = inlined_call_operand.vmem [shape: f32[2,32,1], index: 8, kind: output, shape index: {1}]   ;;  %s1165_s9 = inlined_call_operand.vmem [shape: f32[2,32,1], index: 9, kind: output, shape index: {2}]  }
   0x1   :  { %s1027_s11 = smov 0  }
   0x2 LB: > { %s32_s12 = sadd.s32 1, %s965_s10  ;;  %p863_p0 = scmp.ge.s32.totalorder %s969_s11, 1  ;;  %s969_s11 = sphi %s1027_s11, %s20_s11   ;;  %s965_s10 = sphi %s1025_s10, %s1167_s10   ;;  %s961_s30 = sphi %s1023_s30, %s1166_s30  }
   0x3   : > { %p34_p1 = scmp.ge.s32.totalorder %s32_s12, 2  ;;  %p313_p2 = scmp.lt.s32.totalorder %s969_s11, 3 }
   0x5   : > { %s1169_s12 = smov (%p34_p1, %s32_s12), 0  ;;  %p314_p3 = pnand %p863_p0, %p313_p2 }
   0x6   : > { %p368_p4 = scmp.lt.s32.totalorder (!%p314_p3), %s961_s30, 1 }
   0x7   : > { %317 = sbr.rel (%p314_p3) target bundleno = 607 (0x25f), region = 48 }
   0xc   : > { %v419_v0 = vld [vmem:[%s1158_s2 + $0x10] sm:$0xff]  ;;  %v417_v1 = vld [vmem:[%s1158_s2] sm:$0xff]  ;;  %v971_v2 = vmov 0   ;;  %s1171_s30 = smov (!%p368_p4, %s961_s30), 1  ;;  %v420_v8 = vld [vmem:[%s1158_s2 + $0x18] sm:$0xff]  ;;  %vm461_vm0 = vcmask 130048  }
   0xd   : > { %945 = vset.pattern.permute.xlu1 %v971_v2  ;;  %944 = vset.pattern.permute.xlu0 %v971_v2  ;;  %s908_s17 = sshll.u32 %s1171_s30, 4  ;;  %v914_v10 = vld [vmem:[%s1157_s1] sm:$0xff]  ;;  %v418_v11 = vld [vmem:[%s1158_s2 + $0x8] sm:$0xff]  ;;  %v565_v13 = vld [vmem:[%s1162_s6 + $0x10] sm:$0xff]  ;;  %vm525_vm1 = vcmask 261120   ;;  %vm604_vm2 = vcmask 1043456  }
   0xe   : > { %433 = vperm.xlu0 %944, %v419_v0   ;;  %423 = vperm.xlu1 %945, %v417_v1   ;;  %s375_s20 = scalar_lea.vmem %s1156_s0, %s908_s17  ;;  %v564_v12 = vld [vmem:[%s1162_s6 + $0x8] sm:$0xff]  ;;  %v519_v17 = vld [vmem:[%s1160_s4] sm:$0xff]  ;;  %v566_v25 = vld [vmem:[%s1162_s6 + $0x18] sm:$0xff]  ;;  %s385_s27 = scalar_lea.vmem %s1163_s7, %s908_s17  ;;  %vm597_vm3 = vcmask 64512   ;;  %vm402_vm4 = vcmask 7168  }
   0xf   : > { %946 = vset.pattern.permute.xlu2 %v971_v2  ;;  %v882_v3 = vld [vmem:[%s375_s20] sm:$0xf]  ;;  %v913_v4 = vld [vmem:[%s375_s20 + $0x4] sm:$0xf0]  ;;  %v912_v5 = vld [vmem:[%s375_s20 + $0x4] sm:$0xf] }
  0x10   : > { %v883_v6 = vor.u32 %v913_v4, %v882_v3  ;;  %v884_v7 = vld [vmem:[%s375_s20 + $0x8] sm:$0xf0]  ;;  %522 = vperm.xlu2 %946, %v519_v17   ;;  %v563_v21 = vld [vmem:[%s1162_s6] sm:$0xff]  ;;  %s910_s14 = sshll.u32 %s1171_s30, 5 }
  0x11   : > { %v887_v9 = vor.u32 %v912_v5, %v884_v7  ;;  %v915_v14 = vld [vmem:[%s1157_s1 + $0x8] sm:$0xff]  ;;  %v514_v50 = vld [vmem:[%s1159_s3] sm:$0xf]  ;;  %s1100_s18 = scalar_lea.vmem %s1164_s8, %s910_s14  ;;  %s1107_s20 = scalar_lea.vmem %s1165_s9, %s910_s14 }
  0x12   : > { %475 = vmatpush.bf16.msra.mxu0 %v883_v6  ;;  %v916_v59 = vld [vmem:[%s1161_s5] sm:$0xff]  ;;  %v917_v63 = vld [vmem:[%s1161_s5 + $0x8] sm:$0xff]  ;;  %v972_v6 = vmov 0.0  }
  0x13   : > { %494 = vmatpush.bf16.msra.mxu1 %v887_v9  ;;  %403 = vst.msk [vmem:[%s1100_s18] sm:$0xff] %vm402_vm4, %v972_v6 }
  0x14   : > { %404 = vst.msk [vmem:[%s1100_s18 + $0x8] sm:$0xff] %vm402_vm4, %v972_v6 }
  0x15   : > { %888 = vmatmul.msk.bf16.vlgmr.msra.gmra.mxu0 %vm461_vm0, %v914_v10  ;;  %405 = vst.msk [vmem:[%s1100_s18 + $0x10] sm:$0xff] %vm402_vm4, %v972_v6 }
  0x16   : > { %438 = vperm.xlu0 %944, %v420_v8   ;;  %428 = vperm.xlu1 %945, %v418_v11   ;;  %406 = vst.msk [vmem:[%s1100_s18 + $0x18] sm:$0xff] %vm402_vm4, %v972_v6 }
  0x17   : > { %890 = vmatmul.msk.bf16.vlgmr.msra.gmra.mxu1 %vm461_vm0, %v914_v10  ;;  %407 = vst.msk [vmem:[%s1107_s20] sm:$0xff] %vm402_vm4, %v972_v6 }
  0x18   : > { %569 = vperm.xlu2 %946, %v563_v21   ;;  %408 = vst.msk [vmem:[%s1107_s20 + $0x8] sm:$0xff] %vm402_vm4, %v972_v6 }
  0x19   : > { %409 = vst.msk [vmem:[%s1107_s20 + $0x10] sm:$0xff] %vm402_vm4, %v972_v6 }
  0x1a   : > { %410 = vst.msk [vmem:[%s1107_s20 + $0x18] sm:$0xff] %vm402_vm4, %v972_v6 }
  0x1e   : > { %574 = vperm.xlu0 %944, %v564_v12   ;;  %579 = vperm.xlu1 %945, %v565_v13  }
  0x20   : > { %584 = vperm.xlu2 %946, %v566_v25  }
  0x25   : > { %889 = vmatmul.msk.bf16.gmra.mxu0 %vm461_vm0, %v915_v14 }
  0x27   : > { %891 = vmatmul.msk.bf16.gmra.mxu1 %vm461_vm0, %v915_v14 }
  0x6a   : > { %v523_v51 = vpop.permute.xlu2 %522 }
  0x72   : > { %v570_v0 = vpop.permute.xlu2 %569 }
  0x7a   : > { %v585_v25 = vpop.permute.xlu2 %584 }
  0x80   : > { %v424_v20 = vpop.permute.xlu1 %423  ;;  %v434_v22 = vpop.permute.xlu0 %433 }
  0x88   : > { %v429_v26 = vpop.permute.xlu1 %428  ;;  %v439_v28 = vpop.permute.xlu0 %438 }
  0x90   : > { %v575_v7 = vpop.permute.xlu0 %574 }
  0x92   : > { %v477_v15 = vpop.f32.mrf.mxu0 }
  0x93   : > { %v478_v36 = vadd.f32 %v477_v15, %v424_v20 }
  0x94   : > { %v496_v16 = vpop.f32.mrf.mxu1 }
  0x95   : > { %v497_v39 = vadd.f32 %v496_v16, %v424_v20  ;;  %v506_v46 = vmax.f32 %v478_v36, 0.0  ;;  %v580_v16 = vpop.permute.xlu1 %579 }
  0x97   : > { %v507_v47 = vmax.f32 %v497_v39, 0.0 }
  0x9a   : > { %v479_v18 = vpop.f32.mrf.mxu0 }
  0x9b   : > { %v480_v31 = vadd.f32 %v479_v18, %v429_v26 }
  0x9c   : > { %v498_v19 = vpop.f32.mrf.mxu1 }
  0x9d   : > { %v499_v34 = vadd.f32 %v498_v19, %v429_v26  ;;  %v508_v42 = vmax.f32 %v480_v31, 0.0 }
  0x9f   : > { %v509_v44 = vmax.f32 %v499_v34, 0.0  ;;  %v515_v48 = vpack.c.bf16 %v508_v42, %v506_v46  ;;  %v651_v46 = vld [vmem:[%s1100_s18 + $0x10] sm:$0xff] }
  0xa1   : > { %v516_v49 = vpack.c.bf16 %v509_v44, %v507_v47  ;;  %v675_v47 = vld [vmem:[%s1107_s20 + $0x8] sm:$0xff] }
  0xa2   : > { %v482_v23 = vpop.f32.mrf.mxu0 }
  0xa3   : > { %v483_v27 = vadd.f32 %v482_v23, %v434_v22 }
  0xa4   : > { %v501_v24 = vpop.f32.mrf.mxu1 }
  0xa5   : > { %v502_v29 = vadd.f32 %v501_v24, %v434_v22  ;;  %v510_v37 = vmax.f32 %v483_v27, 0.0 }
  0xa7   : > { %v511_v40 = vmax.f32 %v502_v29, 0.0 }
  0xaa   : > { %v484_v30 = vpop.f32.mrf.mxu0 }
  0xab   : > { %v485_v32 = vadd.f32 %v484_v30, %v439_v28 }
  0xac   : > { %v503_v33 = vpop.f32.mrf.mxu1 }
  0xad   : > { %v504_v35 = vadd.f32 %v503_v33, %v439_v28  ;;  %v512_v38 = vmax.f32 %v485_v32, 0.0 }
  0xaf   : > { %v513_v41 = vmax.f32 %v504_v35, 0.0  ;;  %v517_v43 = vpack.c.bf16 %v512_v38, %v510_v37  ;;  %v649_v37 = vld [vmem:[%s1100_s18] sm:$0xff] }
  0xb1   : > { %v518_v45 = vpack.c.bf16 %v513_v41, %v511_v40  ;;  %535 = vmatpush.bf16.msrb.mxu0 %v517_v43  ;;  %v650_v40 = vld [vmem:[%s1100_s18 + $0x8] sm:$0xff]  ;;  %v674_v41 = vld [vmem:[%s1107_s20] sm:$0xff] }
  0xb3   : > { %548 = vmatpush.bf16.msrb.mxu1 %v518_v45 }
  0xb5   : > { %536 = vmatpush.bf16.msrb.mxu0 %v515_v48 }
  0xb7   : > { %549 = vmatpush.bf16.msrb.mxu1 %v516_v49 }
  0xb8   : > { %892 = vmatmul.msk.bf16.vlgmr.msrb.gmra.mxu0 %vm525_vm1, %v514_v50 }
  0xba   : > { %893 = vmatmul.msk.bf16.vlgmr.msrb.gmra.mxu1 %vm525_vm1, %v514_v50 }
 0x135   : > { %v538_v52 = vpop.f32.mrf.mxu0 }
 0x136   : > { %v539_v53 = vadd.f32 %v538_v52, %v523_v51  ;;  %v652_v52 = vld [vmem:[%s1100_s18 + $0x18] sm:$0xff] }
 0x137   : > { %v551_v54 = vpop.f32.mrf.mxu1 }
 0x138   : > { %v552_v55 = vadd.f32 %v551_v54, %v523_v51  ;;  %555 = vst [vmem:[%s385_s27] sm:$0xff] %v539_v53  ;;  %v561_v56 = vpack.c.bf16 %v539_v53, %v539_v53  ;;  %v677_v54 = vld [vmem:[%s1107_s20 + $0x18] sm:$0xff] }
 0x13a   : > { %556 = vst [vmem:[%s385_s27 + $0x8] sm:$0xff] %v552_v55  ;;  %v562_v57 = vpack.c.bf16 %v552_v55, %v552_v55  ;;  %v606_v58 = vsel %vm604_vm2, %v561_v56, 0 }
 0x13b   : > { %618 = vmatpush.bf16.msra.mxu2 %v606_v58  ;;  %v676_v58 = vld [vmem:[%s1107_s20 + $0x10] sm:$0xff] }
 0x13c   : > { %v609_v60 = vsel %vm604_vm2, %v562_v57, 0 }
 0x13d   : > { %637 = vmatpush.bf16.msra.mxu3 %v609_v60  ;;  %v540_v61 = vpop.f32.mrf.mxu0 }
 0x13e   : > { %902 = vmatmul.msk.bf16.vlgmr.msra.gmra.mxu2 %vm597_vm3, %v916_v59 }
 0x13f   : > { %v553_v62 = vpop.f32.mrf.mxu1 }
 0x140   : > { %904 = vmatmul.msk.bf16.vlgmr.msra.gmra.mxu3 %vm597_vm3, %v916_v59 }
 0x14e   : > { %903 = vmatmul.msk.bf16.gmra.mxu2 %vm597_vm3, %v917_v63 }
 0x150   : > { %905 = vmatmul.msk.bf16.gmra.mxu3 %vm597_vm3, %v917_v63 }
 0x1c1   : > { %v620_v1 = vpop.f32.mrf.mxu2 }
 0x1c2   : > { %v621_v2 = vadd.f32 %v620_v1, %v570_v0 }
 0x1c3   : > { %v639_v3 = vpop.f32.mrf.mxu3 }
 0x1c4   : > { %v640_v4 = vadd.f32 %v639_v3, %v570_v0  ;;  %v678_v8 = vmul.f32 %v621_v2, %v621_v2 }
 0x1c6   : > { %v653_v5 = vadd.f32 %v640_v4, %v621_v2  ;;  %v679_v9 = vmul.f32 %v640_v4, %v640_v4 }
 0x1c8   : > { %654 = vadd.xlane.f32.xlu0 %v653_v5  ;;  %v686_v15 = vadd.f32 %v679_v9, %v678_v8 }
 0x1c9   : > { %v622_v10 = vpop.f32.mrf.mxu2 }
 0x1ca   : > { %v623_v11 = vadd.f32 %v622_v10, %v575_v7 }
 0x1cb   : > { %v641_v12 = vpop.f32.mrf.mxu3 }
 0x1cc   : > { %v642_v13 = vadd.f32 %v641_v12, %v575_v7  ;;  %v680_v17 = vmul.f32 %v623_v11, %v623_v11 }
 0x1ce   : > { %v656_v14 = vadd.f32 %v642_v13, %v623_v11  ;;  %v681_v18 = vmul.f32 %v642_v13, %v642_v13 }
 0x1d0   : > { %657 = vadd.xlane.f32.xlu1 %v656_v14  ;;  %687 = vadd.xlane.f32.xlu0 %v686_v15  ;;  %v689_v24 = vadd.f32 %v681_v18, %v680_v17 }
 0x1d1   : > { %v625_v19 = vpop.f32.mrf.mxu2 }
 0x1d2   : > { %v626_v20 = vadd.f32 %v625_v19, %v580_v16 }
 0x1d3   : > { %v644_v21 = vpop.f32.mrf.mxu3 }
 0x1d4   : > { %v645_v22 = vadd.f32 %v644_v21, %v580_v16  ;;  %v682_v34 = vmul.f32 %v626_v20, %v626_v20 }
 0x1d6   : > { %v659_v23 = vadd.f32 %v645_v22, %v626_v20  ;;  %v683_v35 = vmul.f32 %v645_v22, %v645_v22 }
 0x1d8   : > { %660 = vadd.xlane.f32.xlu2 %v659_v23  ;;  %690 = vadd.xlane.f32.xlu1 %v689_v24  ;;  %v692_v36 = vadd.f32 %v683_v35, %v682_v34 }
 0x1d9   : > { %v627_v26 = vpop.f32.mrf.mxu2 }
 0x1da   : > { %v628_v27 = vadd.f32 %v627_v26, %v585_v25 }
 0x1db   : > { %v646_v28 = vpop.f32.mrf.mxu3 }
 0x1dc   : > { %v647_v29 = vadd.f32 %v646_v28, %v585_v25  ;;  %v684_v30 = vmul.f32 %v628_v27, %v628_v27 }
 0x1de   : > { %v685_v31 = vmul.f32 %v647_v29, %v647_v29  ;;  %v662_v32 = vadd.f32 %v647_v29, %v628_v27 }
 0x1e0   : > { %663 = vadd.xlane.f32.xlu2 %v662_v32  ;;  %v695_v33 = vadd.f32 %v685_v31, %v684_v30 }
 0x1e2   : > { %696 = vadd.xlane.f32.xlu0 %v695_v33 }
 0x1e8   : > { %693 = vadd.xlane.f32.xlu2 %v692_v36 }
 0x23b   : > { %v655_v38 = vpop.xlane.xlu0 %654 }
 0x23c   : > { %v665_v39 = vadd.f32 %v655_v38, %v649_v37 }
 0x23e   : > { %670 = vst.msk [vmem:[%s1100_s18] sm:$0xff] %vm402_vm4, %v665_v39 }
 0x243   : > { %v658_v42 = vpop.xlane.xlu1 %657  ;;  %v688_v43 = vpop.xlane.xlu0 %687 }
 0x244   : > { %v666_v44 = vadd.f32 %v658_v42, %v650_v40  ;;  %v698_v45 = vadd.f32 %v688_v43, %v674_v41 }
 0x246   : > { %671 = vst.msk [vmem:[%s1100_s18 + $0x8] sm:$0xff] %vm402_vm4, %v666_v44 }
 0x247   : > { %702 = vst.msk [vmem:[%s1107_s20] sm:$0xff] %vm402_vm4, %v698_v45 }
 0x24b   : > { %v661_v48 = vpop.xlane.xlu2 %660  ;;  %v691_v49 = vpop.xlane.xlu1 %690 }
 0x24c   : > { %v667_v50 = vadd.f32 %v661_v48, %v651_v46  ;;  %v699_v51 = vadd.f32 %v691_v49, %v675_v47 }
 0x24e   : > { %672 = vst.msk [vmem:[%s1100_s18 + $0x10] sm:$0xff] %vm402_vm4, %v667_v50 }
 0x24f   : > { %703 = vst.msk [vmem:[%s1107_s20 + $0x8] sm:$0xff] %vm402_vm4, %v699_v51 }
 0x253   : > { %v664_v53 = vpop.xlane.xlu2 %663 }
 0x254   : > { %v668_v55 = vadd.f32 %v664_v53, %v652_v52 }
 0x255   : > { %v697_v56 = vpop.xlane.xlu0 %696 }
 0x256   : > { %673 = vst.msk [vmem:[%s1100_s18 + $0x18] sm:$0xff] %vm402_vm4, %v668_v55  ;;  %v701_v57 = vadd.f32 %v697_v56, %v677_v54 }
 0x258   : > { %705 = vst.msk [vmem:[%s1107_s20 + $0x18] sm:$0xff] %vm402_vm4, %v701_v57 }
 0x25b   : > { %v694_v59 = vpop.xlane.xlu2 %693 }
 0x25c   : > { %v700_v60 = vadd.f32 %v694_v59, %v676_v58 }
 0x25e   : > { %704 = vst.msk [vmem:[%s1107_s20 + $0x10] sm:$0xff] %vm402_vm4, %v700_v60 }
 0x25f PF: > { %s20_s11 = sadd.s32 1, %s969_s11   ;;  %s1166_s30 = smov %s965_s10 }
 0x260   : > { %p17_p5 = scmp.ge.s32.totalorder %s20_s11, 4   ;;  %s1167_s10 = smov %s1169_s12 }
 0x262   :  { %19 = sbr.rel (!%p17_p5) target bundleno = 2 (0x2), region = 106 }

// kernel: structural_byol_forward.8
= control target key start
LH: loop header
LB: loop body
LE: loop exit
PB: predicated region body
PF: predicated region fallthrough
CT: control target
= control target key end

     0   :  { %s869_s24 = smov 0   ;;  %s871_s25 = smov 0   ;;  %s984_s0 = inlined_call_operand.vmem [shape: bf16[2,3,256], index: 0, kind: input, shape index: {}]   ;;  %s985_s1 = inlined_call_operand.vmem [shape: bf16[16,3], index: 1, kind: input, shape index: {}]   ;;  %s986_s2 = inlined_call_operand.vmem [shape: f32[16,1], index: 2, kind: input, shape index: {}]   ;;  %s987_s3 = inlined_call_operand.vmem [shape: bf16[32,16], index: 3, kind: input, shape index: {}]   ;;  %s988_s4 = inlined_call_operand.vmem [shape: f32[32,1], index: 4, kind: input, shape index: {}]   ;;  %s989_s5 = inlined_call_operand.vmem [shape: bf16[2,16,256], index: 5, kind: output, shape index: {0}]   ;;  %s990_s6 = inlined_call_operand.vmem [shape: f32[2,32,1], index: 6, kind: output, shape index: {1}]   ;;  %s991_s7 = inlined_call_operand.vmem [shape: f32[2,32,1], index: 7, kind: output, shape index: {2}]  }
   0x1   :  { %s873_s26 = smov 0  }
   0x2 LB: > { %s30_s27 = sadd.s32 1, %s820_s25  ;;  %p736_p0 = scmp.ge.s32.totalorder %s824_s26, 1  ;;  %s824_s26 = sphi %s873_s26, %s18_s26   ;;  %s820_s25 = sphi %s871_s25, %s993_s25   ;;  %s816_s24 = sphi %s869_s24, %s992_s24  }
   0x3   : > { %p32_p1 = scmp.ge.s32.totalorder %s30_s27, 2  ;;  %p263_p2 = scmp.lt.s32.totalorder %s824_s26, 3 }
   0x5   : > { %s995_s27 = smov (%p32_p1, %s30_s27), 0  ;;  %p264_p3 = pnand %p736_p0, %p263_p2 }
   0x6   : > { %p314_p4 = scmp.lt.s32.totalorder (!%p264_p3), %s816_s24, 1 }
   0x7   : > { %267 = sbr.rel (%p264_p3) target bundleno = 463 (0x1cf), region = 40 }
   0xc   : > { %v360_v0 = vld [vmem:[%s986_s2] sm:$0xff]  ;;  %s997_s24 = smov (!%p314_p4, %s816_s24), 1  ;;  %v826_v1 = vmov 0   ;;  %vm385_vm0 = vcmask 1040384   ;;  %v361_v3 = vld [vmem:[%s986_s2 + $0x8] sm:$0xff]  ;;  %vm386_vm1 = vcmask 1041408  }
   0xd   : > { %799 = vset.pattern.permute.xlu0 %v826_v1  ;;  %800 = vset.pattern.permute.xlu1 %v826_v1  ;;  %s765_s30 = sshll.u32 %s997_s24, 2  ;;  %v827_v4 = vmov 65535   ;;  %v769_v11 = vld [vmem:[%s985_s1] sm:$0xff]  ;;  %vm381_vm2 = vcmask 23552   ;;  %s766_s15 = sshll.u32 %s997_s24, 4  ;;  %v435_v21 = vld [vmem:[%s988_s4 + $0x10] sm:$0xff] }
   0xe   : > { %364 = vperm.xlu0 %799, %v360_v0   ;;  %801 = vset.pattern.permute.xlu2 %v826_v1  ;;  %s321_s10 = scalar_lea.vmem %s984_s0, %s765_s30  ;;  %v387_v5 = vsel %vm385_vm0, 4294967295, %v827_v4  ;;  %s331_s18 = scalar_lea.vmem %s989_s5, %s766_s15  ;;  %v433_v20 = vld [vmem:[%s988_s4] sm:$0xff]  ;;  %v434_v29 = vld [vmem:[%s988_s4 + $0x8] sm:$0xff]  ;;  %v436_v30 = vld [vmem:[%s988_s4 + $0x18] sm:$0xff]  ;;  %vm477_vm3 = vcmask 130048   ;;  %vm348_vm4 = vcmask 7168  }
   0xf   : > { %v357_v2 = vld [vmem:[%s321_s10] sm:$0xf]  ;;  %v388_v6 = vsel %vm386_vm1, %v387_v5, 0  ;;  %439 = vperm.xlu1 %800, %v433_v20   ;;  %449 = vperm.xlu2 %801, %v435_v21   ;;  %v771_v39 = vld [vmem:[%s987_s3 + $0x8] sm:$0xff]  ;;  %s767_s12 = sshll.u32 %s997_s24, 5  ;;  %v828_v47 = vmov 0.0  }
  0x10   : > { %378 = vst [vmem:[#allocation1] ss:$4 sm:$0xff] %v357_v2  ;;  %v770_v38 = vld [vmem:[%s987_s3] sm:$0xff]  ;;  %s928_s15 = scalar_lea.vmem %s990_s6, %s767_s12  ;;  %s937_s17 = scalar_lea.vmem %s991_s7, %s767_s12 }
  0x11   : > { %349 = vst.msk [vmem:[%s928_s15] sm:$0xff] %vm348_vm4, %v828_v47 }
  0x12   : > { %350 = vst.msk [vmem:[%s928_s15 + $0x8] sm:$0xff] %vm348_vm4, %v828_v47 }
  0x13   : > { %351 = vst.msk [vmem:[%s928_s15 + $0x10] sm:$0xff] %vm348_vm4, %v828_v47 }
  0x14   : > { %352 = vst.msk [vmem:[%s928_s15 + $0x18] sm:$0xff] %vm348_vm4, %v828_v47 }
  0x15   : > { %353 = vst.msk [vmem:[%s937_s17] sm:$0xff] %vm348_vm4, %v828_v47 }
  0x16   : > { %369 = vperm.xlu0 %799, %v361_v3   ;;  %354 = vst.msk [vmem:[%s937_s17 + $0x8] sm:$0xff] %vm348_vm4, %v828_v47 }
  0x17   : > { %v379_v7 = vld.sshfl [vmem:[#allocation1] sm:$0xff pattern:$0x73625140]  ;;  %v380_v8 = vld.sshfl [vmem:[#allocation1 + $0x8] sm:$0xff pattern:$0x73625140]  ;;  %444 = vperm.xlu1 %800, %v434_v29   ;;  %454 = vperm.xlu2 %801, %v436_v30  }
  0x18   : > { %v389_v9 = vand.u32 %v388_v6, %v379_v7  ;;  %v391_v10 = vand.u32 %v388_v6, %v380_v8  ;;  %355 = vst.msk [vmem:[%s937_s17 + $0x10] sm:$0xff] %vm348_vm4, %v828_v47 }
  0x19   : > { %356 = vst.msk [vmem:[%s937_s17 + $0x18] sm:$0xff] %vm348_vm4, %v828_v47 }
  0x1a   : > { %400 = vmatpush.bf16.msra.mxu0 %v389_v9  ;;  %414 = vmatpush.bf16.msra.mxu1 %v391_v10 }
  0x1d   : > { %749 = vmatmul.msk.bf16.vlgmr.msra.gmra.mxu0 %vm381_vm2, %v769_v11  ;;  %750 = vmatmul.msk.bf16.vlgmr.msra.gmra.mxu1 %vm381_vm2, %v769_v11 }
  0x20   : > { %v550_v30 = vld [vmem:[%s937_s17 + $0x18] sm:$0xff] }
  0x69   : > { %v450_v56 = vpop.permute.xlu2 %449 }
  0x71   : > { %v455_v1 = vpop.permute.xlu2 %454 }
  0x80   : > { %v365_v12 = vpop.permute.xlu0 %364 }
  0x81   : > { %v440_v40 = vpop.permute.xlu1 %439 }
  0x88   : > { %v370_v22 = vpop.permute.xlu0 %369 }
  0x89   : > { %v445_v46 = vpop.permute.xlu1 %444 }
  0x9a   : > { %v402_v13 = vpop.f32.mrf.mxu0  ;;  %v416_v14 = vpop.f32.mrf.mxu1 }
  0x9b   : > { %v403_v15 = vadd.f32 %v402_v13, %v365_v12  ;;  %v417_v16 = vadd.f32 %v416_v14, %v365_v12  ;;  %v522_v13 = vld [vmem:[%s928_s15] sm:$0xff] }
  0x9d   : > { %v421_v17 = vmax.f32 %v403_v15, 0.0  ;;  %v422_v18 = vmax.f32 %v417_v16, 0.0  ;;  %v523_v16 = vld [vmem:[%s928_s15 + $0x8] sm:$0xff] }
  0x9f   : > { %v425_v19 = vpack.c.bf16 %v422_v18, %v421_v17  ;;  %v547_v17 = vld [vmem:[%s937_s17] sm:$0xff] }
  0xa1   : > { %427 = vst [vmem:[%s331_s18] sm:$0xff] %v425_v19  ;;  %v469_v32 = vunpack.c.l.b16 %v425_v19  ;;  %v470_v34 = vunpack.c.h.b16 %v425_v19 }
  0xa2   : > { %v404_v23 = vpop.f32.mrf.mxu0  ;;  %v418_v24 = vpop.f32.mrf.mxu1 }
  0xa3   : > { %v405_v25 = vadd.f32 %v404_v23, %v370_v22  ;;  %v419_v26 = vadd.f32 %v418_v24, %v370_v22  ;;  %v524_v22 = vld [vmem:[%s928_s15 + $0x10] sm:$0xff]  ;;  %v548_v23 = vld [vmem:[%s937_s17 + $0x8] sm:$0xff] }
  0xa5   : > { %v423_v27 = vmax.f32 %v405_v25, 0.0  ;;  %v424_v28 = vmax.f32 %v419_v26, 0.0 }
  0xa7   : > { %v426_v31 = vpack.c.bf16 %v424_v28, %v423_v27  ;;  %v525_v28 = vld [vmem:[%s928_s15 + $0x18] sm:$0xff] }
  0xa9   : > { %428 = vst [vmem:[%s331_s18 + $0x8] sm:$0xff] %v426_v31  ;;  %v471_v33 = vunpack.c.l.b16 %v426_v31  ;;  %v472_v35 = vunpack.c.h.b16 %v426_v31 }
  0xab   : > { %v473_v36 = vpack.c.b16 %v471_v33, %v469_v32  ;;  %v474_v37 = vpack.c.b16 %v472_v35, %v470_v34  ;;  %v549_v34 = vld [vmem:[%s937_s17 + $0x10] sm:$0xff] }
  0xad   : > { %491 = vmatpush.bf16.msra.mxu2 %v473_v36  ;;  %510 = vmatpush.bf16.msra.mxu3 %v474_v37 }
  0xb0   : > { %759 = vmatmul.msk.bf16.vlgmr.msra.gmra.mxu2 %vm477_vm3, %v770_v38  ;;  %761 = vmatmul.msk.bf16.vlgmr.msra.gmra.mxu3 %vm477_vm3, %v770_v38 }
  0xc0   : > { %760 = vmatmul.msk.bf16.gmra.mxu2 %vm477_vm3, %v771_v39  ;;  %762 = vmatmul.msk.bf16.gmra.mxu3 %vm477_vm3, %v771_v39 }
 0x133   : > { %v493_v41 = vpop.f32.mrf.mxu2  ;;  %v512_v42 = vpop.f32.mrf.mxu3 }
 0x134   : > { %v494_v43 = vadd.f32 %v493_v41, %v440_v40  ;;  %v513_v44 = vadd.f32 %v512_v42, %v440_v40 }
 0x136   : > { %v526_v45 = vadd.f32 %v513_v44, %v494_v43  ;;  %v551_v48 = vmul.f32 %v494_v43, %v494_v43  ;;  %v552_v49 = vmul.f32 %v513_v44, %v513_v44 }
 0x138   : > { %527 = vadd.xlane.f32.xlu0 %v526_v45  ;;  %v559_v55 = vadd.f32 %v552_v49, %v551_v48 }
 0x13b   : > { %v495_v50 = vpop.f32.mrf.mxu2  ;;  %v514_v51 = vpop.f32.mrf.mxu3 }
 0x13c   : > { %v496_v52 = vadd.f32 %v495_v50, %v445_v46  ;;  %v515_v53 = vadd.f32 %v514_v51, %v445_v46 }
 0x13e   : > { %v529_v54 = vadd.f32 %v515_v53, %v496_v52  ;;  %v553_v57 = vmul.f32 %v496_v52, %v496_v52  ;;  %v554_v58 = vmul.f32 %v515_v53, %v515_v53 }
 0x140   : > { %530 = vadd.xlane.f32.xlu1 %v529_v54  ;;  %560 = vadd.xlane.f32.xlu0 %v559_v55  ;;  %v562_v0 = vadd.f32 %v554_v58, %v553_v57 }
 0x143   : > { %v498_v59 = vpop.f32.mrf.mxu2  ;;  %v517_v60 = vpop.f32.mrf.mxu3 }
 0x144   : > { %v499_v61 = vadd.f32 %v498_v59, %v450_v56  ;;  %v518_v62 = vadd.f32 %v517_v60, %v450_v56 }
 0x146   : > { %v532_v63 = vadd.f32 %v518_v62, %v499_v61  ;;  %v555_v10 = vmul.f32 %v499_v61, %v499_v61  ;;  %v556_v11 = vmul.f32 %v518_v62, %v518_v62 }
 0x148   : > { %533 = vadd.xlane.f32.xlu2 %v532_v63  ;;  %563 = vadd.xlane.f32.xlu1 %v562_v0  ;;  %v565_v12 = vadd.f32 %v556_v11, %v555_v10 }
 0x14b   : > { %v500_v2 = vpop.f32.mrf.mxu2  ;;  %v519_v3 = vpop.f32.mrf.mxu3 }
 0x14c   : > { %v501_v4 = vadd.f32 %v500_v2, %v455_v1  ;;  %v520_v5 = vadd.f32 %v519_v3, %v455_v1 }
 0x14e   : > { %v557_v6 = vmul.f32 %v501_v4, %v501_v4  ;;  %v558_v7 = vmul.f32 %v520_v5, %v520_v5  ;;  %v535_v8 = vadd.f32 %v520_v5, %v501_v4 }
 0x150   : > { %536 = vadd.xlane.f32.xlu2 %v535_v8  ;;  %v568_v9 = vadd.f32 %v558_v7, %v557_v6 }
 0x152   : > { %569 = vadd.xlane.f32.xlu0 %v568_v9 }
 0x158   : > { %566 = vadd.xlane.f32.xlu2 %v565_v12 }
 0x1ab   : > { %v528_v14 = vpop.xlane.xlu0 %527 }
 0x1ac   : > { %v538_v15 = vadd.f32 %v528_v14, %v522_v13 }
 0x1ae   : > { %543 = vst.msk [vmem:[%s928_s15] sm:$0xff] %vm348_vm4, %v538_v15 }
 0x1b3   : > { %v531_v18 = vpop.xlane.xlu1 %530  ;;  %v561_v19 = vpop.xlane.xlu0 %560 }
 0x1b4   : > { %v539_v20 = vadd.f32 %v531_v18, %v523_v16  ;;  %v571_v21 = vadd.f32 %v561_v19, %v547_v17 }
 0x1b6   : > { %544 = vst.msk [vmem:[%s928_s15 + $0x8] sm:$0xff] %vm348_vm4, %v539_v20 }
 0x1b7   : > { %575 = vst.msk [vmem:[%s937_s17] sm:$0xff] %vm348_vm4, %v571_v21 }
 0x1bb   : > { %v534_v24 = vpop.xlane.xlu2 %533  ;;  %v564_v25 = vpop.xlane.xlu1 %563 }
 0x1bc   : > { %v540_v26 = vadd.f32 %v534_v24, %v524_v22  ;;  %v572_v27 = vadd.f32 %v564_v25, %v548_v23 }
 0x1be   : > { %545 = vst.msk [vmem:[%s928_s15 + $0x10] sm:$0xff] %vm348_vm4, %v540_v26 }
 0x1bf   : > { %576 = vst.msk [vmem:[%s937_s17 + $0x8] sm:$0xff] %vm348_vm4, %v572_v27 }
 0x1c3   : > { %v537_v29 = vpop.xlane.xlu2 %536 }
 0x1c4   : > { %v541_v31 = vadd.f32 %v537_v29, %v525_v28 }
 0x1c5   : > { %v570_v32 = vpop.xlane.xlu0 %569 }
 0x1c6   : > { %546 = vst.msk [vmem:[%s928_s15 + $0x18] sm:$0xff] %vm348_vm4, %v541_v31  ;;  %v574_v33 = vadd.f32 %v570_v32, %v550_v30 }
 0x1c8   : > { %578 = vst.msk [vmem:[%s937_s17 + $0x18] sm:$0xff] %vm348_vm4, %v574_v33 }
 0x1cb   : > { %v567_v35 = vpop.xlane.xlu2 %566 }
 0x1cc   : > { %v573_v36 = vadd.f32 %v567_v35, %v549_v34 }
 0x1ce   : > { %577 = vst.msk [vmem:[%s937_s17 + $0x10] sm:$0xff] %vm348_vm4, %v573_v36 }
 0x1cf PF: > { %s18_s26 = sadd.s32 1, %s824_s26   ;;  %s992_s24 = smov %s820_s25 }
 0x1d0   : > { %p15_p5 = scmp.ge.s32.totalorder %s18_s26, 4   ;;  %s993_s25 = smov %s995_s27 }
 0x1d2   :  { %17 = sbr.rel (!%p15_p5) target bundleno = 2 (0x2), region = 98 }

</bundles_post_ra>
